<compile_context>
chip_gen: v6e
topology: v6e:2x2x1
jax: 0.10.0
libtpu: 0.0.40
codegen_flags: <defaults>
</compile_context>

<pallas_src>
import jax
import jax.numpy as jnp
from jax.experimental import pallas as pl
from jax.experimental.pallas import tpu as pltpu

CIN = 4   # Conv1d in_channels  / ConvTranspose1d out_channels
C1 = 3    # Conv1d out_channels / ConvTranspose1d in_channels
K = 3     # kernel size of both layers


def conv_ae_kernel(w1_ref, b1_ref, w2_ref, b2_ref, x_ref, o_ref, h_scr):
    # x_ref : (CIN, L, TB) VMEM  -- batch tile on lanes, length on sublanes
    # o_ref : (CIN, L, TB) VMEM
    # h_scr : (C1, L+K-1, TB) VMEM scratch (zero halo of K-1 rows on each side)
    # w1_ref: (C1*CIN*K,) f32 SMEM, layout [co, ci, k]   (Conv1d weight)
    # b1_ref: (C1,)       f32 SMEM
    # w2_ref: (C1*CIN*K,) f32 SMEM, layout [ci, co, k]   (ConvTranspose1d weight)
    # b2_ref: (CIN,)      f32 SMEM
    L = x_ref.shape[1]
    TB = x_ref.shape[2]
    Lh = L - K + 1                      # 'valid' Conv1d output length

    # Hoist all scalar weight / bias reads out of the MAC loops (once per step).
    w1 = [[[w1_ref[(co * CIN + ci) * K + k] for k in range(K)]
           for ci in range(CIN)] for co in range(C1)]
    b1 = [b1_ref[co] for co in range(C1)]
    w2 = [[[w2_ref[(ci * CIN + co) * K + k] for k in range(K)]
           for co in range(CIN)] for ci in range(C1)]
    b2 = [b2_ref[co] for co in range(CIN)]

    zero_halo = jnp.zeros((K - 1, TB), jnp.float32)

    # ---- Conv1d(4->3, k=3, stride=1, 'valid') + ReLU  ->  scratch interior ----
    for co in range(C1):
        acc = jnp.full((Lh, TB), b1[co], dtype=jnp.float32)
        for ci in range(CIN):
            for k in range(K):
                acc = acc + w1[co][ci][k] * x_ref[ci, k:k + Lh, :]
        h_scr[co, 0:K - 1, :] = zero_halo
        h_scr[co, K - 1:K - 1 + Lh, :] = jnp.maximum(acc, 0.0)
        h_scr[co, K - 1 + Lh:L + K - 1, :] = zero_halo

    # ---- ConvTranspose1d(3->4, k=3, stride=1) + ReLU ----
    # y[co, t] = b2[co] + sum_{ci,k} h[ci, t-k] * w2[ci, co, k]
    #          = b2[co] + sum_{ci,k} h_pad[ci, (K-1)-k + t] * w2[ci, co, k]
    for co in range(CIN):
        acc = jnp.full((L, TB), b2[co], dtype=jnp.float32)
        for ci in range(C1):
            for k in range(K):
                s = (K - 1) - k
                acc = acc + w2[ci][co][k] * h_scr[ci, s:s + L, :]
        o_ref[co] = jnp.maximum(acc, 0.0)   # direct lane-dense per-channel store


def conv_ae_forward(x, w1, b1, w2, b2, *, batch_tile=None):
    """x: (N, CIN, L) f32 -> (N, CIN, L) f32, matching Conv_AE.forward."""
    N, cin, L = x.shape
    assert cin == CIN
    assert L >= K, "need L >= kernel_size"

    # Batch tile on the lane axis: a multiple of 128, capped at 1024.
    if batch_tile is None:
        batch_tile = min(1024, 128 * pl.cdiv(N, 128))
    n_tiles = pl.cdiv(N, batch_tile)
    n_pad = n_tiles * batch_tile

    # Wrapper-side layout plumbing: (N, CIN, L) -> (CIN, L, N_pad).
    xt = jnp.transpose(x, (1, 2, 0))
    if n_pad != N:
        xt = jnp.pad(xt, ((0, 0), (0, 0), (0, n_pad - N)))

    smem = pl.BlockSpec(memory_space=pltpu.MemorySpace.SMEM)
    out_t = pl.pallas_call(
        conv_ae_kernel,
        out_shape=jax.ShapeDtypeStruct((CIN, L, n_pad), jnp.float32),
        grid_spec=pltpu.PrefetchScalarGridSpec(
            num_scalar_prefetch=0,
            grid=(n_tiles,),
            in_specs=[
                smem,                                                # w1 (flat)
                smem,                                                # b1
                smem,                                                # w2 (flat)
                smem,                                                # b2
                pl.BlockSpec((CIN, L, batch_tile), lambda n: (0, 0, n)),
            ],
            out_specs=pl.BlockSpec((CIN, L, batch_tile), lambda n: (0, 0, n)),
            scratch_shapes=[pltpu.VMEM((C1, L + K - 1, batch_tile), jnp.float32)],
        ),
        compiler_params=pltpu.CompilerParams(
            dimension_semantics=("parallel",),   # independent batch tiles
        ),
    )(w1.reshape(-1), b1, w2.reshape(-1), b2, xt)

    # Back to PyTorch NCL layout and strip the batch padding.
    return jnp.transpose(out_t[:, :, :N], (2, 0, 1))


def ref_forward(x, w1, b1, w2, b2):
    """Pure-JAX reference with PyTorch Conv1d / ConvTranspose1d semantics."""
    N, _, L = x.shape
    Lh = L - K + 1
    h = jnp.zeros((N, C1, Lh), jnp.float32)
    for co in range(C1):
        acc = jnp.zeros((N, Lh), jnp.float32) + b1[co]
        for ci in range(CIN):
            for k in range(K):
                acc = acc + w1[co, ci, k] * x[:, ci, k:k + Lh]
        h = h.at[:, co, :].set(jnp.maximum(acc, 0.0))
    y = jnp.zeros((N, CIN, L), jnp.float32)
    for co in range(CIN):
        acc = jnp.zeros((N, L), jnp.float32) + b2[co]
        for ci in range(C1):
            for k in range(K):
                acc = acc.at[:, k:k + Lh].add(w2[ci, co, k] * h[:, ci, :])
        y = y.at[:, co, :].set(jnp.maximum(acc, 0.0))
    return y


if __name__ == "__main__":
    key = jax.random.PRNGKey(0)
    k_x, k_w1, k_b1, k_w2, k_b2, k_x2 = jax.random.split(key, 6)

    N, L = 2, 16
    x = jax.random.normal(k_x, (N, CIN, L), dtype=jnp.float32)

    # Synthetic parameters; shapes match nn.Conv1d / nn.ConvTranspose1d.
    w1 = jax.random.normal(k_w1, (C1, CIN, K), dtype=jnp.float32) * 0.3   # (O, I, K)
    b1 = jax.random.normal(k_b1, (C1,), dtype=jnp.float32) * 0.1
    w2 = jax.random.normal(k_w2, (C1, CIN, K), dtype=jnp.float32) * 0.3   # (I, O, K)
    b2 = jax.random.normal(k_b2, (CIN,), dtype=jnp.float32) * 0.1

    out = jax.block_until_ready(conv_ae_forward(x, w1, b1, w2, b2))
    ref = ref_forward(x, w1, b1, w2, b2)
    assert out.shape == (N, CIN, L)
    assert jnp.allclose(out, ref, atol=1e-5, rtol=1e-5)

    # Exercise the multi-tile grid + padded-batch path (grid of 2 steps).
    N2 = 1100
    x2 = jax.random.normal(k_x2, (N2, CIN, L), dtype=jnp.float32)
    out2 = jax.block_until_ready(conv_ae_forward(x2, w1, b1, w2, b2))
    ref2 = ref_forward(x2, w1, b1, w2, b2)
    assert out2.shape == (N2, CIN, L)
    assert jnp.allclose(out2, ref2, atol=1e-5, rtol=1e-5)

    print("KERNEL_OK")
</pallas_src>

<mosaic_0001>
module attributes {stable_mosaic.version = 11 : i64} {
  func.func @conv_ae_kernel(%arg0: i32, %arg1: memref<36xf32, #tpu.memory_space<smem>>, %arg2: memref<3xf32, #tpu.memory_space<smem>>, %arg3: memref<36xf32, #tpu.memory_space<smem>>, %arg4: memref<4xf32, #tpu.memory_space<smem>>, %arg5: memref<4x16x128xf32, #tpu.memory_space<vmem>>, %arg6: memref<4x16x128xf32, #tpu.memory_space<vmem>>, %arg7: memref<3x18x128xf32, #tpu.memory_space<vmem>>) attributes {dimension_semantics = [#tpu.dimension_semantics<parallel>], iteration_bounds = array<i64: 1>, scalar_prefetch = 0 : i64, scratch_operands = 1 : i64, tpu.core_type = #tpu.core_type<tc>, window_params = [{transform_indices = @transform_0, window_bounds = array<i64: 36>}, {transform_indices = @transform_1, window_bounds = array<i64: 3>}, {transform_indices = @transform_2, window_bounds = array<i64: 36>}, {transform_indices = @transform_3, window_bounds = array<i64: 4>}, {transform_indices = @transform_4, window_bounds = array<i64: 4, 16, 128>}, {transform_indices = @transform_5, window_bounds = array<i64: 4, 16, 128>}]} {
    %c0 = arith.constant 0 : index
    %0 = memref.load %arg1[%c0] : memref<36xf32, #tpu.memory_space<smem>>
    %c1 = arith.constant 1 : index
    %1 = memref.load %arg1[%c1] : memref<36xf32, #tpu.memory_space<smem>>
    %c2 = arith.constant 2 : index
    %2 = memref.load %arg1[%c2] : memref<36xf32, #tpu.memory_space<smem>>
    %c3 = arith.constant 3 : index
    %3 = memref.load %arg1[%c3] : memref<36xf32, #tpu.memory_space<smem>>
    %c4 = arith.constant 4 : index
    %4 = memref.load %arg1[%c4] : memref<36xf32, #tpu.memory_space<smem>>
    %c5 = arith.constant 5 : index
    %5 = memref.load %arg1[%c5] : memref<36xf32, #tpu.memory_space<smem>>
    %c6 = arith.constant 6 : index
    %6 = memref.load %arg1[%c6] : memref<36xf32, #tpu.memory_space<smem>>
    %c7 = arith.constant 7 : index
    %7 = memref.load %arg1[%c7] : memref<36xf32, #tpu.memory_space<smem>>
    %c8 = arith.constant 8 : index
    %8 = memref.load %arg1[%c8] : memref<36xf32, #tpu.memory_space<smem>>
    %c9 = arith.constant 9 : index
    %9 = memref.load %arg1[%c9] : memref<36xf32, #tpu.memory_space<smem>>
    %c10 = arith.constant 10 : index
    %10 = memref.load %arg1[%c10] : memref<36xf32, #tpu.memory_space<smem>>
    %c11 = arith.constant 11 : index
    %11 = memref.load %arg1[%c11] : memref<36xf32, #tpu.memory_space<smem>>
    %c12 = arith.constant 12 : index
    %12 = memref.load %arg1[%c12] : memref<36xf32, #tpu.memory_space<smem>>
    %c13 = arith.constant 13 : index
    %13 = memref.load %arg1[%c13] : memref<36xf32, #tpu.memory_space<smem>>
    %c14 = arith.constant 14 : index
    %14 = memref.load %arg1[%c14] : memref<36xf32, #tpu.memory_space<smem>>
    %c15 = arith.constant 15 : index
    %15 = memref.load %arg1[%c15] : memref<36xf32, #tpu.memory_space<smem>>
    %c16 = arith.constant 16 : index
    %16 = memref.load %arg1[%c16] : memref<36xf32, #tpu.memory_space<smem>>
    %c17 = arith.constant 17 : index
    %17 = memref.load %arg1[%c17] : memref<36xf32, #tpu.memory_space<smem>>
    %c18 = arith.constant 18 : index
    %18 = memref.load %arg1[%c18] : memref<36xf32, #tpu.memory_space<smem>>
    %c19 = arith.constant 19 : index
    %19 = memref.load %arg1[%c19] : memref<36xf32, #tpu.memory_space<smem>>
    %c20 = arith.constant 20 : index
    %20 = memref.load %arg1[%c20] : memref<36xf32, #tpu.memory_space<smem>>
    %c21 = arith.constant 21 : index
    %21 = memref.load %arg1[%c21] : memref<36xf32, #tpu.memory_space<smem>>
    %c22 = arith.constant 22 : index
    %22 = memref.load %arg1[%c22] : memref<36xf32, #tpu.memory_space<smem>>
    %c23 = arith.constant 23 : index
    %23 = memref.load %arg1[%c23] : memref<36xf32, #tpu.memory_space<smem>>
    %c24 = arith.constant 24 : index
    %24 = memref.load %arg1[%c24] : memref<36xf32, #tpu.memory_space<smem>>
    %c25 = arith.constant 25 : index
    %25 = memref.load %arg1[%c25] : memref<36xf32, #tpu.memory_space<smem>>
    %c26 = arith.constant 26 : index
    %26 = memref.load %arg1[%c26] : memref<36xf32, #tpu.memory_space<smem>>
    %c27 = arith.constant 27 : index
    %27 = memref.load %arg1[%c27] : memref<36xf32, #tpu.memory_space<smem>>
    %c28 = arith.constant 28 : index
    %28 = memref.load %arg1[%c28] : memref<36xf32, #tpu.memory_space<smem>>
    %c29 = arith.constant 29 : index
    %29 = memref.load %arg1[%c29] : memref<36xf32, #tpu.memory_space<smem>>
    %c30 = arith.constant 30 : index
    %30 = memref.load %arg1[%c30] : memref<36xf32, #tpu.memory_space<smem>>
    %c31 = arith.constant 31 : index
    %31 = memref.load %arg1[%c31] : memref<36xf32, #tpu.memory_space<smem>>
    %c32 = arith.constant 32 : index
    %32 = memref.load %arg1[%c32] : memref<36xf32, #tpu.memory_space<smem>>
    %c33 = arith.constant 33 : index
    %33 = memref.load %arg1[%c33] : memref<36xf32, #tpu.memory_space<smem>>
    %c34 = arith.constant 34 : index
    %34 = memref.load %arg1[%c34] : memref<36xf32, #tpu.memory_space<smem>>
    %c35 = arith.constant 35 : index
    %35 = memref.load %arg1[%c35] : memref<36xf32, #tpu.memory_space<smem>>
    %c0_0 = arith.constant 0 : index
    %36 = memref.load %arg2[%c0_0] : memref<3xf32, #tpu.memory_space<smem>>
    %c1_1 = arith.constant 1 : index
    %37 = memref.load %arg2[%c1_1] : memref<3xf32, #tpu.memory_space<smem>>
    %c2_2 = arith.constant 2 : index
    %38 = memref.load %arg2[%c2_2] : memref<3xf32, #tpu.memory_space<smem>>
    %c0_3 = arith.constant 0 : index
    %39 = memref.load %arg3[%c0_3] : memref<36xf32, #tpu.memory_space<smem>>
    %c1_4 = arith.constant 1 : index
    %40 = memref.load %arg3[%c1_4] : memref<36xf32, #tpu.memory_space<smem>>
    %c2_5 = arith.constant 2 : index
    %41 = memref.load %arg3[%c2_5] : memref<36xf32, #tpu.memory_space<smem>>
    %c3_6 = arith.constant 3 : index
    %42 = memref.load %arg3[%c3_6] : memref<36xf32, #tpu.memory_space<smem>>
    %c4_7 = arith.constant 4 : index
    %43 = memref.load %arg3[%c4_7] : memref<36xf32, #tpu.memory_space<smem>>
    %c5_8 = arith.constant 5 : index
    %44 = memref.load %arg3[%c5_8] : memref<36xf32, #tpu.memory_space<smem>>
    %c6_9 = arith.constant 6 : index
    %45 = memref.load %arg3[%c6_9] : memref<36xf32, #tpu.memory_space<smem>>
    %c7_10 = arith.constant 7 : index
    %46 = memref.load %arg3[%c7_10] : memref<36xf32, #tpu.memory_space<smem>>
    %c8_11 = arith.constant 8 : index
    %47 = memref.load %arg3[%c8_11] : memref<36xf32, #tpu.memory_space<smem>>
    %c9_12 = arith.constant 9 : index
    %48 = memref.load %arg3[%c9_12] : memref<36xf32, #tpu.memory_space<smem>>
    %c10_13 = arith.constant 10 : index
    %49 = memref.load %arg3[%c10_13] : memref<36xf32, #tpu.memory_space<smem>>
    %c11_14 = arith.constant 11 : index
    %50 = memref.load %arg3[%c11_14] : memref<36xf32, #tpu.memory_space<smem>>
    %c12_15 = arith.constant 12 : index
    %51 = memref.load %arg3[%c12_15] : memref<36xf32, #tpu.memory_space<smem>>
    %c13_16 = arith.constant 13 : index
    %52 = memref.load %arg3[%c13_16] : memref<36xf32, #tpu.memory_space<smem>>
    %c14_17 = arith.constant 14 : index
    %53 = memref.load %arg3[%c14_17] : memref<36xf32, #tpu.memory_space<smem>>
    %c15_18 = arith.constant 15 : index
    %54 = memref.load %arg3[%c15_18] : memref<36xf32, #tpu.memory_space<smem>>
    %c16_19 = arith.constant 16 : index
    %55 = memref.load %arg3[%c16_19] : memref<36xf32, #tpu.memory_space<smem>>
    %c17_20 = arith.constant 17 : index
    %56 = memref.load %arg3[%c17_20] : memref<36xf32, #tpu.memory_space<smem>>
    %c18_21 = arith.constant 18 : index
    %57 = memref.load %arg3[%c18_21] : memref<36xf32, #tpu.memory_space<smem>>
    %c19_22 = arith.constant 19 : index
    %58 = memref.load %arg3[%c19_22] : memref<36xf32, #tpu.memory_space<smem>>
    %c20_23 = arith.constant 20 : index
    %59 = memref.load %arg3[%c20_23] : memref<36xf32, #tpu.memory_space<smem>>
    %c21_24 = arith.constant 21 : index
    %60 = memref.load %arg3[%c21_24] : memref<36xf32, #tpu.memory_space<smem>>
    %c22_25 = arith.constant 22 : index
    %61 = memref.load %arg3[%c22_25] : memref<36xf32, #tpu.memory_space<smem>>
    %c23_26 = arith.constant 23 : index
    %62 = memref.load %arg3[%c23_26] : memref<36xf32, #tpu.memory_space<smem>>
    %c24_27 = arith.constant 24 : index
    %63 = memref.load %arg3[%c24_27] : memref<36xf32, #tpu.memory_space<smem>>
    %c25_28 = arith.constant 25 : index
    %64 = memref.load %arg3[%c25_28] : memref<36xf32, #tpu.memory_space<smem>>
    %c26_29 = arith.constant 26 : index
    %65 = memref.load %arg3[%c26_29] : memref<36xf32, #tpu.memory_space<smem>>
    %c27_30 = arith.constant 27 : index
    %66 = memref.load %arg3[%c27_30] : memref<36xf32, #tpu.memory_space<smem>>
    %c28_31 = arith.constant 28 : index
    %67 = memref.load %arg3[%c28_31] : memref<36xf32, #tpu.memory_space<smem>>
    %c29_32 = arith.constant 29 : index
    %68 = memref.load %arg3[%c29_32] : memref<36xf32, #tpu.memory_space<smem>>
    %c30_33 = arith.constant 30 : index
    %69 = memref.load %arg3[%c30_33] : memref<36xf32, #tpu.memory_space<smem>>
    %c31_34 = arith.constant 31 : index
    %70 = memref.load %arg3[%c31_34] : memref<36xf32, #tpu.memory_space<smem>>
    %c32_35 = arith.constant 32 : index
    %71 = memref.load %arg3[%c32_35] : memref<36xf32, #tpu.memory_space<smem>>
    %c33_36 = arith.constant 33 : index
    %72 = memref.load %arg3[%c33_36] : memref<36xf32, #tpu.memory_space<smem>>
    %c34_37 = arith.constant 34 : index
    %73 = memref.load %arg3[%c34_37] : memref<36xf32, #tpu.memory_space<smem>>
    %c35_38 = arith.constant 35 : index
    %74 = memref.load %arg3[%c35_38] : memref<36xf32, #tpu.memory_space<smem>>
    %c0_39 = arith.constant 0 : index
    %75 = memref.load %arg4[%c0_39] : memref<4xf32, #tpu.memory_space<smem>>
    %c1_40 = arith.constant 1 : index
    %76 = memref.load %arg4[%c1_40] : memref<4xf32, #tpu.memory_space<smem>>
    %c2_41 = arith.constant 2 : index
    %77 = memref.load %arg4[%c2_41] : memref<4xf32, #tpu.memory_space<smem>>
    %c3_42 = arith.constant 3 : index
    %78 = memref.load %arg4[%c3_42] : memref<4xf32, #tpu.memory_space<smem>>
    %cst = arith.constant 0.000000e+00 : f32
    %79 = vector.broadcast %cst : f32 to vector<2x128xf32>
    %80 = vector.broadcast %36 : f32 to vector<14x128xf32>
    %c0_43 = arith.constant 0 : index
    %c0_44 = arith.constant 0 : index
    %c0_45 = arith.constant 0 : index
    %81 = vector.load %arg5[%c0_43, %c0_44, %c0_45] : memref<4x16x128xf32, #tpu.memory_space<vmem>>, vector<1x14x128xf32>
    %82 = vector.shape_cast %81 : vector<1x14x128xf32> to vector<14x128xf32>
    %83 = vector.broadcast %0 : f32 to vector<14x128xf32>
    %84 = arith.mulf %83, %82 : vector<14x128xf32>
    %85 = arith.addf %80, %84 : vector<14x128xf32>
    %c0_46 = arith.constant 0 : index
    %c1_47 = arith.constant 1 : index
    %c0_48 = arith.constant 0 : index
    %86 = vector.load %arg5[%c0_46, %c1_47, %c0_48] : memref<4x16x128xf32, #tpu.memory_space<vmem>>, vector<1x14x128xf32>
    %87 = vector.shape_cast %86 : vector<1x14x128xf32> to vector<14x128xf32>
    %88 = vector.broadcast %1 : f32 to vector<14x128xf32>
    %89 = arith.mulf %88, %87 : vector<14x128xf32>
    %90 = arith.addf %85, %89 : vector<14x128xf32>
    %c0_49 = arith.constant 0 : index
    %c2_50 = arith.constant 2 : index
    %c0_51 = arith.constant 0 : index
    %91 = vector.load %arg5[%c0_49, %c2_50, %c0_51] : memref<4x16x128xf32, #tpu.memory_space<vmem>>, vector<1x14x128xf32>
    %92 = vector.shape_cast %91 : vector<1x14x128xf32> to vector<14x128xf32>
    %93 = vector.broadcast %2 : f32 to vector<14x128xf32>
    %94 = arith.mulf %93, %92 : vector<14x128xf32>
    %95 = arith.addf %90, %94 : vector<14x128xf32>
    %c1_52 = arith.constant 1 : index
    %c0_53 = arith.constant 0 : index
    %c0_54 = arith.constant 0 : index
    %96 = vector.load %arg5[%c1_52, %c0_53, %c0_54] : memref<4x16x128xf32, #tpu.memory_space<vmem>>, vector<1x14x128xf32>
    %97 = vector.shape_cast %96 : vector<1x14x128xf32> to vector<14x128xf32>
    %98 = vector.broadcast %3 : f32 to vector<14x128xf32>
    %99 = arith.mulf %98, %97 : vector<14x128xf32>
    %100 = arith.addf %95, %99 : vector<14x128xf32>
    %c1_55 = arith.constant 1 : index
    %c1_56 = arith.constant 1 : index
    %c0_57 = arith.constant 0 : index
    %101 = vector.load %arg5[%c1_55, %c1_56, %c0_57] : memref<4x16x128xf32, #tpu.memory_space<vmem>>, vector<1x14x128xf32>
    %102 = vector.shape_cast %101 : vector<1x14x128xf32> to vector<14x128xf32>
    %103 = vector.broadcast %4 : f32 to vector<14x128xf32>
    %104 = arith.mulf %103, %102 : vector<14x128xf32>
    %105 = arith.addf %100, %104 : vector<14x128xf32>
    %c1_58 = arith.constant 1 : index
    %c2_59 = arith.constant 2 : index
    %c0_60 = arith.constant 0 : index
    %106 = vector.load %arg5[%c1_58, %c2_59, %c0_60] : memref<4x16x128xf32, #tpu.memory_space<vmem>>, vector<1x14x128xf32>
    %107 = vector.shape_cast %106 : vector<1x14x128xf32> to vector<14x128xf32>
    %108 = vector.broadcast %5 : f32 to vector<14x128xf32>
    %109 = arith.mulf %108, %107 : vector<14x128xf32>
    %110 = arith.addf %105, %109 : vector<14x128xf32>
    %c2_61 = arith.constant 2 : index
    %c0_62 = arith.constant 0 : index
    %c0_63 = arith.constant 0 : index
    %111 = vector.load %arg5[%c2_61, %c0_62, %c0_63] : memref<4x16x128xf32, #tpu.memory_space<vmem>>, vector<1x14x128xf32>
    %112 = vector.shape_cast %111 : vector<1x14x128xf32> to vector<14x128xf32>
    %113 = vector.broadcast %6 : f32 to vector<14x128xf32>
    %114 = arith.mulf %113, %112 : vector<14x128xf32>
    %115 = arith.addf %110, %114 : vector<14x128xf32>
    %c2_64 = arith.constant 2 : index
    %c1_65 = arith.constant 1 : index
    %c0_66 = arith.constant 0 : index
    %116 = vector.load %arg5[%c2_64, %c1_65, %c0_66] : memref<4x16x128xf32, #tpu.memory_space<vmem>>, vector<1x14x128xf32>
    %117 = vector.shape_cast %116 : vector<1x14x128xf32> to vector<14x128xf32>
    %118 = vector.broadcast %7 : f32 to vector<14x128xf32>
    %119 = arith.mulf %118, %117 : vector<14x128xf32>
    %120 = arith.addf %115, %119 : vector<14x128xf32>
    %c2_67 = arith.constant 2 : index
    %c2_68 = arith.constant 2 : index
    %c0_69 = arith.constant 0 : index
    %121 = vector.load %arg5[%c2_67, %c2_68, %c0_69] : memref<4x16x128xf32, #tpu.memory_space<vmem>>, vector<1x14x128xf32>
    %122 = vector.shape_cast %121 : vector<1x14x128xf32> to vector<14x128xf32>
    %123 = vector.broadcast %8 : f32 to vector<14x128xf32>
    %124 = arith.mulf %123, %122 : vector<14x128xf32>
    %125 = arith.addf %120, %124 : vector<14x128xf32>
    %c3_70 = arith.constant 3 : index
    %c0_71 = arith.constant 0 : index
    %c0_72 = arith.constant 0 : index
    %126 = vector.load %arg5[%c3_70, %c0_71, %c0_72] : memref<4x16x128xf32, #tpu.memory_space<vmem>>, vector<1x14x128xf32>
    %127 = vector.shape_cast %126 : vector<1x14x128xf32> to vector<14x128xf32>
    %128 = vector.broadcast %9 : f32 to vector<14x128xf32>
    %129 = arith.mulf %128, %127 : vector<14x128xf32>
    %130 = arith.addf %125, %129 : vector<14x128xf32>
    %c3_73 = arith.constant 3 : index
    %c1_74 = arith.constant 1 : index
    %c0_75 = arith.constant 0 : index
    %131 = vector.load %arg5[%c3_73, %c1_74, %c0_75] : memref<4x16x128xf32, #tpu.memory_space<vmem>>, vector<1x14x128xf32>
    %132 = vector.shape_cast %131 : vector<1x14x128xf32> to vector<14x128xf32>
    %133 = vector.broadcast %10 : f32 to vector<14x128xf32>
    %134 = arith.mulf %133, %132 : vector<14x128xf32>
    %135 = arith.addf %130, %134 : vector<14x128xf32>
    %c3_76 = arith.constant 3 : index
    %c2_77 = arith.constant 2 : index
    %c0_78 = arith.constant 0 : index
    %136 = vector.load %arg5[%c3_76, %c2_77, %c0_78] : memref<4x16x128xf32, #tpu.memory_space<vmem>>, vector<1x14x128xf32>
    %137 = vector.shape_cast %136 : vector<1x14x128xf32> to vector<14x128xf32>
    %138 = vector.broadcast %11 : f32 to vector<14x128xf32>
    %139 = arith.mulf %138, %137 : vector<14x128xf32>
    %140 = arith.addf %135, %139 : vector<14x128xf32>
    %c0_79 = arith.constant 0 : index
    %c0_80 = arith.constant 0 : index
    %c0_81 = arith.constant 0 : index
    %141 = vector.load %arg7[%c0_79, %c0_80, %c0_81] : memref<3x18x128xf32, #tpu.memory_space<vmem>>, vector<1x2x128xf32>
    %142 = vector.shape_cast %141 : vector<1x2x128xf32> to vector<2x128xf32>
    %143 = vector.shape_cast %79 : vector<2x128xf32> to vector<1x2x128xf32>
    tpu.vector_store %arg7[%c0_79, %c0_80, %c0_81], %143 {strides = array<i32>} : memref<3x18x128xf32, #tpu.memory_space<vmem>>, vector<1x2x128xf32>,
    %cst_82 = arith.constant 0.000000e+00 : f32
    %144 = vector.broadcast %cst_82 : f32 to vector<14x128xf32>
    %145 = arith.maximumf %140, %144 : vector<14x128xf32>
    %c0_83 = arith.constant 0 : index
    %c2_84 = arith.constant 2 : index
    %c0_85 = arith.constant 0 : index
    %146 = vector.load %arg7[%c0_83, %c2_84, %c0_85] : memref<3x18x128xf32, #tpu.memory_space<vmem>>, vector<1x14x128xf32>
    %147 = vector.shape_cast %146 : vector<1x14x128xf32> to vector<14x128xf32>
    %148 = vector.shape_cast %145 : vector<14x128xf32> to vector<1x14x128xf32>
    tpu.vector_store %arg7[%c0_83, %c2_84, %c0_85], %148 {strides = array<i32>} : memref<3x18x128xf32, #tpu.memory_space<vmem>>, vector<1x14x128xf32>,
    %c0_86 = arith.constant 0 : index
    %c16_87 = arith.constant 16 : index
    %c0_88 = arith.constant 0 : index
    %149 = vector.load %arg7[%c0_86, %c16_87, %c0_88] : memref<3x18x128xf32, #tpu.memory_space<vmem>>, vector<1x2x128xf32>
    %150 = vector.shape_cast %149 : vector<1x2x128xf32> to vector<2x128xf32>
    %151 = vector.shape_cast %79 : vector<2x128xf32> to vector<1x2x128xf32>
    tpu.vector_store %arg7[%c0_86, %c16_87, %c0_88], %151 {strides = array<i32>} : memref<3x18x128xf32, #tpu.memory_space<vmem>>, vector<1x2x128xf32>,
    %152 = vector.broadcast %37 : f32 to vector<14x128xf32>
    %c0_89 = arith.constant 0 : index
    %c0_90 = arith.constant 0 : index
    %c0_91 = arith.constant 0 : index
    %153 = vector.load %arg5[%c0_89, %c0_90, %c0_91] : memref<4x16x128xf32, #tpu.memory_space<vmem>>, vector<1x14x128xf32>
    %154 = vector.shape_cast %153 : vector<1x14x128xf32> to vector<14x128xf32>
    %155 = vector.broadcast %12 : f32 to vector<14x128xf32>
    %156 = arith.mulf %155, %154 : vector<14x128xf32>
    %157 = arith.addf %152, %156 : vector<14x128xf32>
    %c0_92 = arith.constant 0 : index
    %c1_93 = arith.constant 1 : index
    %c0_94 = arith.constant 0 : index
    %158 = vector.load %arg5[%c0_92, %c1_93, %c0_94] : memref<4x16x128xf32, #tpu.memory_space<vmem>>, vector<1x14x128xf32>
    %159 = vector.shape_cast %158 : vector<1x14x128xf32> to vector<14x128xf32>
    %160 = vector.broadcast %13 : f32 to vector<14x128xf32>
    %161 = arith.mulf %160, %159 : vector<14x128xf32>
    %162 = arith.addf %157, %161 : vector<14x128xf32>
    %c0_95 = arith.constant 0 : index
    %c2_96 = arith.constant 2 : index
    %c0_97 = arith.constant 0 : index
    %163 = vector.load %arg5[%c0_95, %c2_96, %c0_97] : memref<4x16x128xf32, #tpu.memory_space<vmem>>, vector<1x14x128xf32>
    %164 = vector.shape_cast %163 : vector<1x14x128xf32> to vector<14x128xf32>
    %165 = vector.broadcast %14 : f32 to vector<14x128xf32>
    %166 = arith.mulf %165, %164 : vector<14x128xf32>
    %167 = arith.addf %162, %166 : vector<14x128xf32>
    %c1_98 = arith.constant 1 : index
    %c0_99 = arith.constant 0 : index
    %c0_100 = arith.constant 0 : index
    %168 = vector.load %arg5[%c1_98, %c0_99, %c0_100] : memref<4x16x128xf32, #tpu.memory_space<vmem>>, vector<1x14x128xf32>
    %169 = vector.shape_cast %168 : vector<1x14x128xf32> to vector<14x128xf32>
    %170 = vector.broadcast %15 : f32 to vector<14x128xf32>
    %171 = arith.mulf %170, %169 : vector<14x128xf32>
    %172 = arith.addf %167, %171 : vector<14x128xf32>
    %c1_101 = arith.constant 1 : index
    %c1_102 = arith.constant 1 : index
    %c0_103 = arith.constant 0 : index
    %173 = vector.load %arg5[%c1_101, %c1_102, %c0_103] : memref<4x16x128xf32, #tpu.memory_space<vmem>>, vector<1x14x128xf32>
    %174 = vector.shape_cast %173 : vector<1x14x128xf32> to vector<14x128xf32>
    %175 = vector.broadcast %16 : f32 to vector<14x128xf32>
    %176 = arith.mulf %175, %174 : vector<14x128xf32>
    %177 = arith.addf %172, %176 : vector<14x128xf32>
    %c1_104 = arith.constant 1 : index
    %c2_105 = arith.constant 2 : index
    %c0_106 = arith.constant 0 : index
    %178 = vector.load %arg5[%c1_104, %c2_105, %c0_106] : memref<4x16x128xf32, #tpu.memory_space<vmem>>, vector<1x14x128xf32>
    %179 = vector.shape_cast %178 : vector<1x14x128xf32> to vector<14x128xf32>
    %180 = vector.broadcast %17 : f32 to vector<14x128xf32>
    %181 = arith.mulf %180, %179 : vector<14x128xf32>
    %182 = arith.addf %177, %181 : vector<14x128xf32>
    %c2_107 = arith.constant 2 : index
    %c0_108 = arith.constant 0 : index
    %c0_109 = arith.constant 0 : index
    %183 = vector.load %arg5[%c2_107, %c0_108, %c0_109] : memref<4x16x128xf32, #tpu.memory_space<vmem>>, vector<1x14x128xf32>
    %184 = vector.shape_cast %183 : vector<1x14x128xf32> to vector<14x128xf32>
    %185 = vector.broadcast %18 : f32 to vector<14x128xf32>
    %186 = arith.mulf %185, %184 : vector<14x128xf32>
    %187 = arith.addf %182, %186 : vector<14x128xf32>
    %c2_110 = arith.constant 2 : index
    %c1_111 = arith.constant 1 : index
    %c0_112 = arith.constant 0 : index
    %188 = vector.load %arg5[%c2_110, %c1_111, %c0_112] : memref<4x16x128xf32, #tpu.memory_space<vmem>>, vector<1x14x128xf32>
    %189 = vector.shape_cast %188 : vector<1x14x128xf32> to vector<14x128xf32>
    %190 = vector.broadcast %19 : f32 to vector<14x128xf32>
    %191 = arith.mulf %190, %189 : vector<14x128xf32>
    %192 = arith.addf %187, %191 : vector<14x128xf32>
    %c2_113 = arith.constant 2 : index
    %c2_114 = arith.constant 2 : index
    %c0_115 = arith.constant 0 : index
    %193 = vector.load %arg5[%c2_113, %c2_114, %c0_115] : memref<4x16x128xf32, #tpu.memory_space<vmem>>, vector<1x14x128xf32>
    %194 = vector.shape_cast %193 : vector<1x14x128xf32> to vector<14x128xf32>
    %195 = vector.broadcast %20 : f32 to vector<14x128xf32>
    %196 = arith.mulf %195, %194 : vector<14x128xf32>
    %197 = arith.addf %192, %196 : vector<14x128xf32>
    %c3_116 = arith.constant 3 : index
    %c0_117 = arith.constant 0 : index
    %c0_118 = arith.constant 0 : index
    %198 = vector.load %arg5[%c3_116, %c0_117, %c0_118] : memref<4x16x128xf32, #tpu.memory_space<vmem>>, vector<1x14x128xf32>
    %199 = vector.shape_cast %198 : vector<1x14x128xf32> to vector<14x128xf32>
    %200 = vector.broadcast %21 : f32 to vector<14x128xf32>
    %201 = arith.mulf %200, %199 : vector<14x128xf32>
    %202 = arith.addf %197, %201 : vector<14x128xf32>
    %c3_119 = arith.constant 3 : index
    %c1_120 = arith.constant 1 : index
    %c0_121 = arith.constant 0 : index
    %203 = vector.load %arg5[%c3_119, %c1_120, %c0_121] : memref<4x16x128xf32, #tpu.memory_space<vmem>>, vector<1x14x128xf32>
    %204 = vector.shape_cast %203 : vector<1x14x128xf32> to vector<14x128xf32>
    %205 = vector.broadcast %22 : f32 to vector<14x128xf32>
    %206 = arith.mulf %205, %204 : vector<14x128xf32>
    %207 = arith.addf %202, %206 : vector<14x128xf32>
    %c3_122 = arith.constant 3 : index
    %c2_123 = arith.constant 2 : index
    %c0_124 = arith.constant 0 : index
    %208 = vector.load %arg5[%c3_122, %c2_123, %c0_124] : memref<4x16x128xf32, #tpu.memory_space<vmem>>, vector<1x14x128xf32>
    %209 = vector.shape_cast %208 : vector<1x14x128xf32> to vector<14x128xf32>
    %210 = vector.broadcast %23 : f32 to vector<14x128xf32>
    %211 = arith.mulf %210, %209 : vector<14x128xf32>
    %212 = arith.addf %207, %211 : vector<14x128xf32>
    %c1_125 = arith.constant 1 : index
    %c0_126 = arith.constant 0 : index
    %c0_127 = arith.constant 0 : index
    %213 = vector.load %arg7[%c1_125, %c0_126, %c0_127] : memref<3x18x128xf32, #tpu.memory_space<vmem>>, vector<1x2x128xf32>
    %214 = vector.shape_cast %213 : vector<1x2x128xf32> to vector<2x128xf32>
    %215 = vector.shape_cast %79 : vector<2x128xf32> to vector<1x2x128xf32>
    tpu.vector_store %arg7[%c1_125, %c0_126, %c0_127], %215 {strides = array<i32>} : memref<3x18x128xf32, #tpu.memory_space<vmem>>, vector<1x2x128xf32>,
    %cst_128 = arith.constant 0.000000e+00 : f32
    %216 = vector.broadcast %cst_128 : f32 to vector<14x128xf32>
    %217 = arith.maximumf %212, %216 : vector<14x128xf32>
    %c1_129 = arith.constant 1 : index
    %c2_130 = arith.constant 2 : index
    %c0_131 = arith.constant 0 : index
    %218 = vector.load %arg7[%c1_129, %c2_130, %c0_131] : memref<3x18x128xf32, #tpu.memory_space<vmem>>, vector<1x14x128xf32>
    %219 = vector.shape_cast %218 : vector<1x14x128xf32> to vector<14x128xf32>
    %220 = vector.shape_cast %217 : vector<14x128xf32> to vector<1x14x128xf32>
    tpu.vector_store %arg7[%c1_129, %c2_130, %c0_131], %220 {strides = array<i32>} : memref<3x18x128xf32, #tpu.memory_space<vmem>>, vector<1x14x128xf32>,
    %c1_132 = arith.constant 1 : index
    %c16_133 = arith.constant 16 : index
    %c0_134 = arith.constant 0 : index
    %221 = vector.load %arg7[%c1_132, %c16_133, %c0_134] : memref<3x18x128xf32, #tpu.memory_space<vmem>>, vector<1x2x128xf32>
    %222 = vector.shape_cast %221 : vector<1x2x128xf32> to vector<2x128xf32>
    %223 = vector.shape_cast %79 : vector<2x128xf32> to vector<1x2x128xf32>
    tpu.vector_store %arg7[%c1_132, %c16_133, %c0_134], %223 {strides = array<i32>} : memref<3x18x128xf32, #tpu.memory_space<vmem>>, vector<1x2x128xf32>,
    %224 = vector.broadcast %38 : f32 to vector<14x128xf32>
    %c0_135 = arith.constant 0 : index
    %c0_136 = arith.constant 0 : index
    %c0_137 = arith.constant 0 : index
    %225 = vector.load %arg5[%c0_135, %c0_136, %c0_137] : memref<4x16x128xf32, #tpu.memory_space<vmem>>, vector<1x14x128xf32>
    %226 = vector.shape_cast %225 : vector<1x14x128xf32> to vector<14x128xf32>
    %227 = vector.broadcast %24 : f32 to vector<14x128xf32>
    %228 = arith.mulf %227, %226 : vector<14x128xf32>
    %229 = arith.addf %224, %228 : vector<14x128xf32>
    %c0_138 = arith.constant 0 : index
    %c1_139 = arith.constant 1 : index
    %c0_140 = arith.constant 0 : index
    %230 = vector.load %arg5[%c0_138, %c1_139, %c0_140] : memref<4x16x128xf32, #tpu.memory_space<vmem>>, vector<1x14x128xf32>
    %231 = vector.shape_cast %230 : vector<1x14x128xf32> to vector<14x128xf32>
    %232 = vector.broadcast %25 : f32 to vector<14x128xf32>
    %233 = arith.mulf %232, %231 : vector<14x128xf32>
    %234 = arith.addf %229, %233 : vector<14x128xf32>
    %c0_141 = arith.constant 0 : index
    %c2_142 = arith.constant 2 : index
    %c0_143 = arith.constant 0 : index
    %235 = vector.load %arg5[%c0_141, %c2_142, %c0_143] : memref<4x16x128xf32, #tpu.memory_space<vmem>>, vector<1x14x128xf32>
    %236 = vector.shape_cast %235 : vector<1x14x128xf32> to vector<14x128xf32>
    %237 = vector.broadcast %26 : f32 to vector<14x128xf32>
    %238 = arith.mulf %237, %236 : vector<14x128xf32>
    %239 = arith.addf %234, %238 : vector<14x128xf32>
    %c1_144 = arith.constant 1 : index
    %c0_145 = arith.constant 0 : index
    %c0_146 = arith.constant 0 : index
    %240 = vector.load %arg5[%c1_144, %c0_145, %c0_146] : memref<4x16x128xf32, #tpu.memory_space<vmem>>, vector<1x14x128xf32>
    %241 = vector.shape_cast %240 : vector<1x14x128xf32> to vector<14x128xf32>
    %242 = vector.broadcast %27 : f32 to vector<14x128xf32>
    %243 = arith.mulf %242, %241 : vector<14x128xf32>
    %244 = arith.addf %239, %243 : vector<14x128xf32>
    %c1_147 = arith.constant 1 : index
    %c1_148 = arith.constant 1 : index
    %c0_149 = arith.constant 0 : index
    %245 = vector.load %arg5[%c1_147, %c1_148, %c0_149] : memref<4x16x128xf32, #tpu.memory_space<vmem>>, vector<1x14x128xf32>
    %246 = vector.shape_cast %245 : vector<1x14x128xf32> to vector<14x128xf32>
    %247 = vector.broadcast %28 : f32 to vector<14x128xf32>
    %248 = arith.mulf %247, %246 : vector<14x128xf32>
    %249 = arith.addf %244, %248 : vector<14x128xf32>
    %c1_150 = arith.constant 1 : index
    %c2_151 = arith.constant 2 : index
    %c0_152 = arith.constant 0 : index
    %250 = vector.load %arg5[%c1_150, %c2_151, %c0_152] : memref<4x16x128xf32, #tpu.memory_space<vmem>>, vector<1x14x128xf32>
    %251 = vector.shape_cast %250 : vector<1x14x128xf32> to vector<14x128xf32>
    %252 = vector.broadcast %29 : f32 to vector<14x128xf32>
    %253 = arith.mulf %252, %251 : vector<14x128xf32>
    %254 = arith.addf %249, %253 : vector<14x128xf32>
    %c2_153 = arith.constant 2 : index
    %c0_154 = arith.constant 0 : index
    %c0_155 = arith.constant 0 : index
    %255 = vector.load %arg5[%c2_153, %c0_154, %c0_155] : memref<4x16x128xf32, #tpu.memory_space<vmem>>, vector<1x14x128xf32>
    %256 = vector.shape_cast %255 : vector<1x14x128xf32> to vector<14x128xf32>
    %257 = vector.broadcast %30 : f32 to vector<14x128xf32>
    %258 = arith.mulf %257, %256 : vector<14x128xf32>
    %259 = arith.addf %254, %258 : vector<14x128xf32>
    %c2_156 = arith.constant 2 : index
    %c1_157 = arith.constant 1 : index
    %c0_158 = arith.constant 0 : index
    %260 = vector.load %arg5[%c2_156, %c1_157, %c0_158] : memref<4x16x128xf32, #tpu.memory_space<vmem>>, vector<1x14x128xf32>
    %261 = vector.shape_cast %260 : vector<1x14x128xf32> to vector<14x128xf32>
    %262 = vector.broadcast %31 : f32 to vector<14x128xf32>
    %263 = arith.mulf %262, %261 : vector<14x128xf32>
    %264 = arith.addf %259, %263 : vector<14x128xf32>
    %c2_159 = arith.constant 2 : index
    %c2_160 = arith.constant 2 : index
    %c0_161 = arith.constant 0 : index
    %265 = vector.load %arg5[%c2_159, %c2_160, %c0_161] : memref<4x16x128xf32, #tpu.memory_space<vmem>>, vector<1x14x128xf32>
    %266 = vector.shape_cast %265 : vector<1x14x128xf32> to vector<14x128xf32>
    %267 = vector.broadcast %32 : f32 to vector<14x128xf32>
    %268 = arith.mulf %267, %266 : vector<14x128xf32>
    %269 = arith.addf %264, %268 : vector<14x128xf32>
    %c3_162 = arith.constant 3 : index
    %c0_163 = arith.constant 0 : index
    %c0_164 = arith.constant 0 : index
    %270 = vector.load %arg5[%c3_162, %c0_163, %c0_164] : memref<4x16x128xf32, #tpu.memory_space<vmem>>, vector<1x14x128xf32>
    %271 = vector.shape_cast %270 : vector<1x14x128xf32> to vector<14x128xf32>
    %272 = vector.broadcast %33 : f32 to vector<14x128xf32>
    %273 = arith.mulf %272, %271 : vector<14x128xf32>
    %274 = arith.addf %269, %273 : vector<14x128xf32>
    %c3_165 = arith.constant 3 : index
    %c1_166 = arith.constant 1 : index
    %c0_167 = arith.constant 0 : index
    %275 = vector.load %arg5[%c3_165, %c1_166, %c0_167] : memref<4x16x128xf32, #tpu.memory_space<vmem>>, vector<1x14x128xf32>
    %276 = vector.shape_cast %275 : vector<1x14x128xf32> to vector<14x128xf32>
    %277 = vector.broadcast %34 : f32 to vector<14x128xf32>
    %278 = arith.mulf %277, %276 : vector<14x128xf32>
    %279 = arith.addf %274, %278 : vector<14x128xf32>
    %c3_168 = arith.constant 3 : index
    %c2_169 = arith.constant 2 : index
    %c0_170 = arith.constant 0 : index
    %280 = vector.load %arg5[%c3_168, %c2_169, %c0_170] : memref<4x16x128xf32, #tpu.memory_space<vmem>>, vector<1x14x128xf32>
    %281 = vector.shape_cast %280 : vector<1x14x128xf32> to vector<14x128xf32>
    %282 = vector.broadcast %35 : f32 to vector<14x128xf32>
    %283 = arith.mulf %282, %281 : vector<14x128xf32>
    %284 = arith.addf %279, %283 : vector<14x128xf32>
    %c2_171 = arith.constant 2 : index
    %c0_172 = arith.constant 0 : index
    %c0_173 = arith.constant 0 : index
    %285 = vector.load %arg7[%c2_171, %c0_172, %c0_173] : memref<3x18x128xf32, #tpu.memory_space<vmem>>, vector<1x2x128xf32>
    %286 = vector.shape_cast %285 : vector<1x2x128xf32> to vector<2x128xf32>
    %287 = vector.shape_cast %79 : vector<2x128xf32> to vector<1x2x128xf32>
    tpu.vector_store %arg7[%c2_171, %c0_172, %c0_173], %287 {strides = array<i32>} : memref<3x18x128xf32, #tpu.memory_space<vmem>>, vector<1x2x128xf32>,
    %cst_174 = arith.constant 0.000000e+00 : f32
    %288 = vector.broadcast %cst_174 : f32 to vector<14x128xf32>
    %289 = arith.maximumf %284, %288 : vector<14x128xf32>
    %c2_175 = arith.constant 2 : index
    %c2_176 = arith.constant 2 : index
    %c0_177 = arith.constant 0 : index
    %290 = vector.load %arg7[%c2_175, %c2_176, %c0_177] : memref<3x18x128xf32, #tpu.memory_space<vmem>>, vector<1x14x128xf32>
    %291 = vector.shape_cast %290 : vector<1x14x128xf32> to vector<14x128xf32>
    %292 = vector.shape_cast %289 : vector<14x128xf32> to vector<1x14x128xf32>
    tpu.vector_store %arg7[%c2_175, %c2_176, %c0_177], %292 {strides = array<i32>} : memref<3x18x128xf32, #tpu.memory_space<vmem>>, vector<1x14x128xf32>,
    %c2_178 = arith.constant 2 : index
    %c16_179 = arith.constant 16 : index
    %c0_180 = arith.constant 0 : index
    %293 = vector.load %arg7[%c2_178, %c16_179, %c0_180] : memref<3x18x128xf32, #tpu.memory_space<vmem>>, vector<1x2x128xf32>
    %294 = vector.shape_cast %293 : vector<1x2x128xf32> to vector<2x128xf32>
    %295 = vector.shape_cast %79 : vector<2x128xf32> to vector<1x2x128xf32>
    tpu.vector_store %arg7[%c2_178, %c16_179, %c0_180], %295 {strides = array<i32>} : memref<3x18x128xf32, #tpu.memory_space<vmem>>, vector<1x2x128xf32>,
    %296 = vector.broadcast %75 : f32 to vector<16x128xf32>
    %c0_181 = arith.constant 0 : index
    %c2_182 = arith.constant 2 : index
    %c0_183 = arith.constant 0 : index
    %297 = vector.load %arg7[%c0_181, %c2_182, %c0_183] : memref<3x18x128xf32, #tpu.memory_space<vmem>>, vector<1x16x128xf32>
    %298 = vector.shape_cast %297 : vector<1x16x128xf32> to vector<16x128xf32>
    %299 = vector.broadcast %39 : f32 to vector<16x128xf32>
    %300 = arith.mulf %299, %298 : vector<16x128xf32>
    %301 = arith.addf %296, %300 : vector<16x128xf32>
    %c0_184 = arith.constant 0 : index
    %c1_185 = arith.constant 1 : index
    %c0_186 = arith.constant 0 : index
    %302 = vector.load %arg7[%c0_184, %c1_185, %c0_186] : memref<3x18x128xf32, #tpu.memory_space<vmem>>, vector<1x16x128xf32>
    %303 = vector.shape_cast %302 : vector<1x16x128xf32> to vector<16x128xf32>
    %304 = vector.broadcast %40 : f32 to vector<16x128xf32>
    %305 = arith.mulf %304, %303 : vector<16x128xf32>
    %306 = arith.addf %301, %305 : vector<16x128xf32>
    %c0_187 = arith.constant 0 : index
    %c0_188 = arith.constant 0 : index
    %c0_189 = arith.constant 0 : index
    %307 = vector.load %arg7[%c0_187, %c0_188, %c0_189] : memref<3x18x128xf32, #tpu.memory_space<vmem>>, vector<1x16x128xf32>
    %308 = vector.shape_cast %307 : vector<1x16x128xf32> to vector<16x128xf32>
    %309 = vector.broadcast %41 : f32 to vector<16x128xf32>
    %310 = arith.mulf %309, %308 : vector<16x128xf32>
    %311 = arith.addf %306, %310 : vector<16x128xf32>
    %c1_190 = arith.constant 1 : index
    %c2_191 = arith.constant 2 : index
    %c0_192 = arith.constant 0 : index
    %312 = vector.load %arg7[%c1_190, %c2_191, %c0_192] : memref<3x18x128xf32, #tpu.memory_space<vmem>>, vector<1x16x128xf32>
    %313 = vector.shape_cast %312 : vector<1x16x128xf32> to vector<16x128xf32>
    %314 = vector.broadcast %51 : f32 to vector<16x128xf32>
    %315 = arith.mulf %314, %313 : vector<16x128xf32>
    %316 = arith.addf %311, %315 : vector<16x128xf32>
    %c1_193 = arith.constant 1 : index
    %c1_194 = arith.constant 1 : index
    %c0_195 = arith.constant 0 : index
    %317 = vector.load %arg7[%c1_193, %c1_194, %c0_195] : memref<3x18x128xf32, #tpu.memory_space<vmem>>, vector<1x16x128xf32>
    %318 = vector.shape_cast %317 : vector<1x16x128xf32> to vector<16x128xf32>
    %319 = vector.broadcast %52 : f32 to vector<16x128xf32>
    %320 = arith.mulf %319, %318 : vector<16x128xf32>
    %321 = arith.addf %316, %320 : vector<16x128xf32>
    %c1_196 = arith.constant 1 : index
    %c0_197 = arith.constant 0 : index
    %c0_198 = arith.constant 0 : index
    %322 = vector.load %arg7[%c1_196, %c0_197, %c0_198] : memref<3x18x128xf32, #tpu.memory_space<vmem>>, vector<1x16x128xf32>
    %323 = vector.shape_cast %322 : vector<1x16x128xf32> to vector<16x128xf32>
    %324 = vector.broadcast %53 : f32 to vector<16x128xf32>
    %325 = arith.mulf %324, %323 : vector<16x128xf32>
    %326 = arith.addf %321, %325 : vector<16x128xf32>
    %c2_199 = arith.constant 2 : index
    %c2_200 = arith.constant 2 : index
    %c0_201 = arith.constant 0 : index
    %327 = vector.load %arg7[%c2_199, %c2_200, %c0_201] : memref<3x18x128xf32, #tpu.memory_space<vmem>>, vector<1x16x128xf32>
    %328 = vector.shape_cast %327 : vector<1x16x128xf32> to vector<16x128xf32>
    %329 = vector.broadcast %63 : f32 to vector<16x128xf32>
    %330 = arith.mulf %329, %328 : vector<16x128xf32>
    %331 = arith.addf %326, %330 : vector<16x128xf32>
    %c2_202 = arith.constant 2 : index
    %c1_203 = arith.constant 1 : index
    %c0_204 = arith.constant 0 : index
    %332 = vector.load %arg7[%c2_202, %c1_203, %c0_204] : memref<3x18x128xf32, #tpu.memory_space<vmem>>, vector<1x16x128xf32>
    %333 = vector.shape_cast %332 : vector<1x16x128xf32> to vector<16x128xf32>
    %334 = vector.broadcast %64 : f32 to vector<16x128xf32>
    %335 = arith.mulf %334, %333 : vector<16x128xf32>
    %336 = arith.addf %331, %335 : vector<16x128xf32>
    %c2_205 = arith.constant 2 : index
    %c0_206 = arith.constant 0 : index
    %c0_207 = arith.constant 0 : index
    %337 = vector.load %arg7[%c2_205, %c0_206, %c0_207] : memref<3x18x128xf32, #tpu.memory_space<vmem>>, vector<1x16x128xf32>
    %338 = vector.shape_cast %337 : vector<1x16x128xf32> to vector<16x128xf32>
    %339 = vector.broadcast %65 : f32 to vector<16x128xf32>
    %340 = arith.mulf %339, %338 : vector<16x128xf32>
    %341 = arith.addf %336, %340 : vector<16x128xf32>
    %cst_208 = arith.constant 0.000000e+00 : f32
    %342 = vector.broadcast %cst_208 : f32 to vector<16x128xf32>
    %343 = arith.maximumf %341, %342 : vector<16x128xf32>
    %c0_209 = arith.constant 0 : index
    %c0_210 = arith.constant 0 : index
    %c0_211 = arith.constant 0 : index
    %344 = vector.load %arg6[%c0_209, %c0_210, %c0_211] : memref<4x16x128xf32, #tpu.memory_space<vmem>>, vector<1x16x128xf32>
    %345 = vector.shape_cast %344 : vector<1x16x128xf32> to vector<16x128xf32>
    %346 = vector.shape_cast %343 : vector<16x128xf32> to vector<1x16x128xf32>
    tpu.vector_store %arg6[%c0_209, %c0_210, %c0_211], %346 {strides = array<i32>} : memref<4x16x128xf32, #tpu.memory_space<vmem>>, vector<1x16x128xf32>,
    %347 = vector.broadcast %76 : f32 to vector<16x128xf32>
    %c0_212 = arith.constant 0 : index
    %c2_213 = arith.constant 2 : index
    %c0_214 = arith.constant 0 : index
    %348 = vector.load %arg7[%c0_212, %c2_213, %c0_214] : memref<3x18x128xf32, #tpu.memory_space<vmem>>, vector<1x16x128xf32>
    %349 = vector.shape_cast %348 : vector<1x16x128xf32> to vector<16x128xf32>
    %350 = vector.broadcast %42 : f32 to vector<16x128xf32>
    %351 = arith.mulf %350, %349 : vector<16x128xf32>
    %352 = arith.addf %347, %351 : vector<16x128xf32>
    %c0_215 = arith.constant 0 : index
    %c1_216 = arith.constant 1 : index
    %c0_217 = arith.constant 0 : index
    %353 = vector.load %arg7[%c0_215, %c1_216, %c0_217] : memref<3x18x128xf32, #tpu.memory_space<vmem>>, vector<1x16x128xf32>
    %354 = vector.shape_cast %353 : vector<1x16x128xf32> to vector<16x128xf32>
    %355 = vector.broadcast %43 : f32 to vector<16x128xf32>
    %356 = arith.mulf %355, %354 : vector<16x128xf32>
    %357 = arith.addf %352, %356 : vector<16x128xf32>
    %c0_218 = arith.constant 0 : index
    %c0_219 = arith.constant 0 : index
    %c0_220 = arith.constant 0 : index
    %358 = vector.load %arg7[%c0_218, %c0_219, %c0_220] : memref<3x18x128xf32, #tpu.memory_space<vmem>>, vector<1x16x128xf32>
    %359 = vector.shape_cast %358 : vector<1x16x128xf32> to vector<16x128xf32>
    %360 = vector.broadcast %44 : f32 to vector<16x128xf32>
    %361 = arith.mulf %360, %359 : vector<16x128xf32>
    %362 = arith.addf %357, %361 : vector<16x128xf32>
    %c1_221 = arith.constant 1 : index
    %c2_222 = arith.constant 2 : index
    %c0_223 = arith.constant 0 : index
    %363 = vector.load %arg7[%c1_221, %c2_222, %c0_223] : memref<3x18x128xf32, #tpu.memory_space<vmem>>, vector<1x16x128xf32>
    %364 = vector.shape_cast %363 : vector<1x16x128xf32> to vector<16x128xf32>
    %365 = vector.broadcast %54 : f32 to vector<16x128xf32>
    %366 = arith.mulf %365, %364 : vector<16x128xf32>
    %367 = arith.addf %362, %366 : vector<16x128xf32>
    %c1_224 = arith.constant 1 : index
    %c1_225 = arith.constant 1 : index
    %c0_226 = arith.constant 0 : index
    %368 = vector.load %arg7[%c1_224, %c1_225, %c0_226] : memref<3x18x128xf32, #tpu.memory_space<vmem>>, vector<1x16x128xf32>
    %369 = vector.shape_cast %368 : vector<1x16x128xf32> to vector<16x128xf32>
    %370 = vector.broadcast %55 : f32 to vector<16x128xf32>
    %371 = arith.mulf %370, %369 : vector<16x128xf32>
    %372 = arith.addf %367, %371 : vector<16x128xf32>
    %c1_227 = arith.constant 1 : index
    %c0_228 = arith.constant 0 : index
    %c0_229 = arith.constant 0 : index
    %373 = vector.load %arg7[%c1_227, %c0_228, %c0_229] : memref<3x18x128xf32, #tpu.memory_space<vmem>>, vector<1x16x128xf32>
    %374 = vector.shape_cast %373 : vector<1x16x128xf32> to vector<16x128xf32>
    %375 = vector.broadcast %56 : f32 to vector<16x128xf32>
    %376 = arith.mulf %375, %374 : vector<16x128xf32>
    %377 = arith.addf %372, %376 : vector<16x128xf32>
    %c2_230 = arith.constant 2 : index
    %c2_231 = arith.constant 2 : index
    %c0_232 = arith.constant 0 : index
    %378 = vector.load %arg7[%c2_230, %c2_231, %c0_232] : memref<3x18x128xf32, #tpu.memory_space<vmem>>, vector<1x16x128xf32>
    %379 = vector.shape_cast %378 : vector<1x16x128xf32> to vector<16x128xf32>
    %380 = vector.broadcast %66 : f32 to vector<16x128xf32>
    %381 = arith.mulf %380, %379 : vector<16x128xf32>
    %382 = arith.addf %377, %381 : vector<16x128xf32>
    %c2_233 = arith.constant 2 : index
    %c1_234 = arith.constant 1 : index
    %c0_235 = arith.constant 0 : index
    %383 = vector.load %arg7[%c2_233, %c1_234, %c0_235] : memref<3x18x128xf32, #tpu.memory_space<vmem>>, vector<1x16x128xf32>
    %384 = vector.shape_cast %383 : vector<1x16x128xf32> to vector<16x128xf32>
    %385 = vector.broadcast %67 : f32 to vector<16x128xf32>
    %386 = arith.mulf %385, %384 : vector<16x128xf32>
    %387 = arith.addf %382, %386 : vector<16x128xf32>
    %c2_236 = arith.constant 2 : index
    %c0_237 = arith.constant 0 : index
    %c0_238 = arith.constant 0 : index
    %388 = vector.load %arg7[%c2_236, %c0_237, %c0_238] : memref<3x18x128xf32, #tpu.memory_space<vmem>>, vector<1x16x128xf32>
    %389 = vector.shape_cast %388 : vector<1x16x128xf32> to vector<16x128xf32>
    %390 = vector.broadcast %68 : f32 to vector<16x128xf32>
    %391 = arith.mulf %390, %389 : vector<16x128xf32>
    %392 = arith.addf %387, %391 : vector<16x128xf32>
    %cst_239 = arith.constant 0.000000e+00 : f32
    %393 = vector.broadcast %cst_239 : f32 to vector<16x128xf32>
    %394 = arith.maximumf %392, %393 : vector<16x128xf32>
    %c1_240 = arith.constant 1 : index
    %c0_241 = arith.constant 0 : index
    %c0_242 = arith.constant 0 : index
    %395 = vector.load %arg6[%c1_240, %c0_241, %c0_242] : memref<4x16x128xf32, #tpu.memory_space<vmem>>, vector<1x16x128xf32>
    %396 = vector.shape_cast %395 : vector<1x16x128xf32> to vector<16x128xf32>
    %397 = vector.shape_cast %394 : vector<16x128xf32> to vector<1x16x128xf32>
    tpu.vector_store %arg6[%c1_240, %c0_241, %c0_242], %397 {strides = array<i32>} : memref<4x16x128xf32, #tpu.memory_space<vmem>>, vector<1x16x128xf32>,
    %398 = vector.broadcast %77 : f32 to vector<16x128xf32>
    %c0_243 = arith.constant 0 : index
    %c2_244 = arith.constant 2 : index
    %c0_245 = arith.constant 0 : index
    %399 = vector.load %arg7[%c0_243, %c2_244, %c0_245] : memref<3x18x128xf32, #tpu.memory_space<vmem>>, vector<1x16x128xf32>
    %400 = vector.shape_cast %399 : vector<1x16x128xf32> to vector<16x128xf32>
    %401 = vector.broadcast %45 : f32 to vector<16x128xf32>
    %402 = arith.mulf %401, %400 : vector<16x128xf32>
    %403 = arith.addf %398, %402 : vector<16x128xf32>
    %c0_246 = arith.constant 0 : index
    %c1_247 = arith.constant 1 : index
    %c0_248 = arith.constant 0 : index
    %404 = vector.load %arg7[%c0_246, %c1_247, %c0_248] : memref<3x18x128xf32, #tpu.memory_space<vmem>>, vector<1x16x128xf32>
    %405 = vector.shape_cast %404 : vector<1x16x128xf32> to vector<16x128xf32>
    %406 = vector.broadcast %46 : f32 to vector<16x128xf32>
    %407 = arith.mulf %406, %405 : vector<16x128xf32>
    %408 = arith.addf %403, %407 : vector<16x128xf32>
    %c0_249 = arith.constant 0 : index
    %c0_250 = arith.constant 0 : index
    %c0_251 = arith.constant 0 : index
    %409 = vector.load %arg7[%c0_249, %c0_250, %c0_251] : memref<3x18x128xf32, #tpu.memory_space<vmem>>, vector<1x16x128xf32>
    %410 = vector.shape_cast %409 : vector<1x16x128xf32> to vector<16x128xf32>
    %411 = vector.broadcast %47 : f32 to vector<16x128xf32>
    %412 = arith.mulf %411, %410 : vector<16x128xf32>
    %413 = arith.addf %408, %412 : vector<16x128xf32>
    %c1_252 = arith.constant 1 : index
    %c2_253 = arith.constant 2 : index
    %c0_254 = arith.constant 0 : index
    %414 = vector.load %arg7[%c1_252, %c2_253, %c0_254] : memref<3x18x128xf32, #tpu.memory_space<vmem>>, vector<1x16x128xf32>
    %415 = vector.shape_cast %414 : vector<1x16x128xf32> to vector<16x128xf32>
    %416 = vector.broadcast %57 : f32 to vector<16x128xf32>
    %417 = arith.mulf %416, %415 : vector<16x128xf32>
    %418 = arith.addf %413, %417 : vector<16x128xf32>
    %c1_255 = arith.constant 1 : index
    %c1_256 = arith.constant 1 : index
    %c0_257 = arith.constant 0 : index
    %419 = vector.load %arg7[%c1_255, %c1_256, %c0_257] : memref<3x18x128xf32, #tpu.memory_space<vmem>>, vector<1x16x128xf32>
    %420 = vector.shape_cast %419 : vector<1x16x128xf32> to vector<16x128xf32>
    %421 = vector.broadcast %58 : f32 to vector<16x128xf32>
    %422 = arith.mulf %421, %420 : vector<16x128xf32>
    %423 = arith.addf %418, %422 : vector<16x128xf32>
    %c1_258 = arith.constant 1 : index
    %c0_259 = arith.constant 0 : index
    %c0_260 = arith.constant 0 : index
    %424 = vector.load %arg7[%c1_258, %c0_259, %c0_260] : memref<3x18x128xf32, #tpu.memory_space<vmem>>, vector<1x16x128xf32>
    %425 = vector.shape_cast %424 : vector<1x16x128xf32> to vector<16x128xf32>
    %426 = vector.broadcast %59 : f32 to vector<16x128xf32>
    %427 = arith.mulf %426, %425 : vector<16x128xf32>
    %428 = arith.addf %423, %427 : vector<16x128xf32>
    %c2_261 = arith.constant 2 : index
    %c2_262 = arith.constant 2 : index
    %c0_263 = arith.constant 0 : index
    %429 = vector.load %arg7[%c2_261, %c2_262, %c0_263] : memref<3x18x128xf32, #tpu.memory_space<vmem>>, vector<1x16x128xf32>
    %430 = vector.shape_cast %429 : vector<1x16x128xf32> to vector<16x128xf32>
    %431 = vector.broadcast %69 : f32 to vector<16x128xf32>
    %432 = arith.mulf %431, %430 : vector<16x128xf32>
    %433 = arith.addf %428, %432 : vector<16x128xf32>
    %c2_264 = arith.constant 2 : index
    %c1_265 = arith.constant 1 : index
    %c0_266 = arith.constant 0 : index
    %434 = vector.load %arg7[%c2_264, %c1_265, %c0_266] : memref<3x18x128xf32, #tpu.memory_space<vmem>>, vector<1x16x128xf32>
    %435 = vector.shape_cast %434 : vector<1x16x128xf32> to vector<16x128xf32>
    %436 = vector.broadcast %70 : f32 to vector<16x128xf32>
    %437 = arith.mulf %436, %435 : vector<16x128xf32>
    %438 = arith.addf %433, %437 : vector<16x128xf32>
    %c2_267 = arith.constant 2 : index
    %c0_268 = arith.constant 0 : index
    %c0_269 = arith.constant 0 : index
    %439 = vector.load %arg7[%c2_267, %c0_268, %c0_269] : memref<3x18x128xf32, #tpu.memory_space<vmem>>, vector<1x16x128xf32>
    %440 = vector.shape_cast %439 : vector<1x16x128xf32> to vector<16x128xf32>
    %441 = vector.broadcast %71 : f32 to vector<16x128xf32>
    %442 = arith.mulf %441, %440 : vector<16x128xf32>
    %443 = arith.addf %438, %442 : vector<16x128xf32>
    %cst_270 = arith.constant 0.000000e+00 : f32
    %444 = vector.broadcast %cst_270 : f32 to vector<16x128xf32>
    %445 = arith.maximumf %443, %444 : vector<16x128xf32>
    %c2_271 = arith.constant 2 : index
    %c0_272 = arith.constant 0 : index
    %c0_273 = arith.constant 0 : index
    %446 = vector.load %arg6[%c2_271, %c0_272, %c0_273] : memref<4x16x128xf32, #tpu.memory_space<vmem>>, vector<1x16x128xf32>
    %447 = vector.shape_cast %446 : vector<1x16x128xf32> to vector<16x128xf32>
    %448 = vector.shape_cast %445 : vector<16x128xf32> to vector<1x16x128xf32>
    tpu.vector_store %arg6[%c2_271, %c0_272, %c0_273], %448 {strides = array<i32>} : memref<4x16x128xf32, #tpu.memory_space<vmem>>, vector<1x16x128xf32>,
    %449 = vector.broadcast %78 : f32 to vector<16x128xf32>
    %c0_274 = arith.constant 0 : index
    %c2_275 = arith.constant 2 : index
    %c0_276 = arith.constant 0 : index
    %450 = vector.load %arg7[%c0_274, %c2_275, %c0_276] : memref<3x18x128xf32, #tpu.memory_space<vmem>>, vector<1x16x128xf32>
    %451 = vector.shape_cast %450 : vector<1x16x128xf32> to vector<16x128xf32>
    %452 = vector.broadcast %48 : f32 to vector<16x128xf32>
    %453 = arith.mulf %452, %451 : vector<16x128xf32>
    %454 = arith.addf %449, %453 : vector<16x128xf32>
    %c0_277 = arith.constant 0 : index
    %c1_278 = arith.constant 1 : index
    %c0_279 = arith.constant 0 : index
    %455 = vector.load %arg7[%c0_277, %c1_278, %c0_279] : memref<3x18x128xf32, #tpu.memory_space<vmem>>, vector<1x16x128xf32>
    %456 = vector.shape_cast %455 : vector<1x16x128xf32> to vector<16x128xf32>
    %457 = vector.broadcast %49 : f32 to vector<16x128xf32>
    %458 = arith.mulf %457, %456 : vector<16x128xf32>
    %459 = arith.addf %454, %458 : vector<16x128xf32>
    %c0_280 = arith.constant 0 : index
    %c0_281 = arith.constant 0 : index
    %c0_282 = arith.constant 0 : index
    %460 = vector.load %arg7[%c0_280, %c0_281, %c0_282] : memref<3x18x128xf32, #tpu.memory_space<vmem>>, vector<1x16x128xf32>
    %461 = vector.shape_cast %460 : vector<1x16x128xf32> to vector<16x128xf32>
    %462 = vector.broadcast %50 : f32 to vector<16x128xf32>
    %463 = arith.mulf %462, %461 : vector<16x128xf32>
    %464 = arith.addf %459, %463 : vector<16x128xf32>
    %c1_283 = arith.constant 1 : index
    %c2_284 = arith.constant 2 : index
    %c0_285 = arith.constant 0 : index
    %465 = vector.load %arg7[%c1_283, %c2_284, %c0_285] : memref<3x18x128xf32, #tpu.memory_space<vmem>>, vector<1x16x128xf32>
    %466 = vector.shape_cast %465 : vector<1x16x128xf32> to vector<16x128xf32>
    %467 = vector.broadcast %60 : f32 to vector<16x128xf32>
    %468 = arith.mulf %467, %466 : vector<16x128xf32>
    %469 = arith.addf %464, %468 : vector<16x128xf32>
    %c1_286 = arith.constant 1 : index
    %c1_287 = arith.constant 1 : index
    %c0_288 = arith.constant 0 : index
    %470 = vector.load %arg7[%c1_286, %c1_287, %c0_288] : memref<3x18x128xf32, #tpu.memory_space<vmem>>, vector<1x16x128xf32>
    %471 = vector.shape_cast %470 : vector<1x16x128xf32> to vector<16x128xf32>
    %472 = vector.broadcast %61 : f32 to vector<16x128xf32>
    %473 = arith.mulf %472, %471 : vector<16x128xf32>
    %474 = arith.addf %469, %473 : vector<16x128xf32>
    %c1_289 = arith.constant 1 : index
    %c0_290 = arith.constant 0 : index
    %c0_291 = arith.constant 0 : index
    %475 = vector.load %arg7[%c1_289, %c0_290, %c0_291] : memref<3x18x128xf32, #tpu.memory_space<vmem>>, vector<1x16x128xf32>
    %476 = vector.shape_cast %475 : vector<1x16x128xf32> to vector<16x128xf32>
    %477 = vector.broadcast %62 : f32 to vector<16x128xf32>
    %478 = arith.mulf %477, %476 : vector<16x128xf32>
    %479 = arith.addf %474, %478 : vector<16x128xf32>
    %c2_292 = arith.constant 2 : index
    %c2_293 = arith.constant 2 : index
    %c0_294 = arith.constant 0 : index
    %480 = vector.load %arg7[%c2_292, %c2_293, %c0_294] : memref<3x18x128xf32, #tpu.memory_space<vmem>>, vector<1x16x128xf32>
    %481 = vector.shape_cast %480 : vector<1x16x128xf32> to vector<16x128xf32>
    %482 = vector.broadcast %72 : f32 to vector<16x128xf32>
    %483 = arith.mulf %482, %481 : vector<16x128xf32>
    %484 = arith.addf %479, %483 : vector<16x128xf32>
    %c2_295 = arith.constant 2 : index
    %c1_296 = arith.constant 1 : index
    %c0_297 = arith.constant 0 : index
    %485 = vector.load %arg7[%c2_295, %c1_296, %c0_297] : memref<3x18x128xf32, #tpu.memory_space<vmem>>, vector<1x16x128xf32>
    %486 = vector.shape_cast %485 : vector<1x16x128xf32> to vector<16x128xf32>
    %487 = vector.broadcast %73 : f32 to vector<16x128xf32>
    %488 = arith.mulf %487, %486 : vector<16x128xf32>
    %489 = arith.addf %484, %488 : vector<16x128xf32>
    %c2_298 = arith.constant 2 : index
    %c0_299 = arith.constant 0 : index
    %c0_300 = arith.constant 0 : index
    %490 = vector.load %arg7[%c2_298, %c0_299, %c0_300] : memref<3x18x128xf32, #tpu.memory_space<vmem>>, vector<1x16x128xf32>
    %491 = vector.shape_cast %490 : vector<1x16x128xf32> to vector<16x128xf32>
    %492 = vector.broadcast %74 : f32 to vector<16x128xf32>
    %493 = arith.mulf %492, %491 : vector<16x128xf32>
    %494 = arith.addf %489, %493 : vector<16x128xf32>
    %cst_301 = arith.constant 0.000000e+00 : f32
    %495 = vector.broadcast %cst_301 : f32 to vector<16x128xf32>
    %496 = arith.maximumf %494, %495 : vector<16x128xf32>
    %c3_302 = arith.constant 3 : index
    %c0_303 = arith.constant 0 : index
    %c0_304 = arith.constant 0 : index
    %497 = vector.load %arg6[%c3_302, %c0_303, %c0_304] : memref<4x16x128xf32, #tpu.memory_space<vmem>>, vector<1x16x128xf32>
    %498 = vector.shape_cast %497 : vector<1x16x128xf32> to vector<16x128xf32>
    %499 = vector.shape_cast %496 : vector<16x128xf32> to vector<1x16x128xf32>
    tpu.vector_store %arg6[%c3_302, %c0_303, %c0_304], %499 {strides = array<i32>} : memref<4x16x128xf32, #tpu.memory_space<vmem>>, vector<1x16x128xf32>,
    return
  }
  func.func @transform_0(%arg0: i32) -> i32 {
    %c0_i32 = arith.constant 0 : i32
    %c0_i32_0 = arith.constant 0 : i32
    return %c0_i32 : i32
  }
  func.func @transform_1(%arg0: i32) -> i32 {
    %c0_i32 = arith.constant 0 : i32
    %c0_i32_0 = arith.constant 0 : i32
    return %c0_i32 : i32
  }
  func.func @transform_2(%arg0: i32) -> i32 {
    %c0_i32 = arith.constant 0 : i32
    %c0_i32_0 = arith.constant 0 : i32
    return %c0_i32 : i32
  }
  func.func @transform_3(%arg0: i32) -> i32 {
    %c0_i32 = arith.constant 0 : i32
    %c0_i32_0 = arith.constant 0 : i32
    return %c0_i32 : i32
  }
  func.func @transform_4(%arg0: i32) -> (i32, i32, i32) {
    %c0_i32 = arith.constant 0 : i32
    %c0_i32_0 = arith.constant 0 : i32
    %c0_i32_1 = arith.constant 0 : i32
    return %c0_i32, %c0_i32_0, %arg0 : i32, i32, i32
  }
  func.func @transform_5(%arg0: i32) -> (i32, i32, i32) {
    %c0_i32 = arith.constant 0 : i32
    %c0_i32_0 = arith.constant 0 : i32
    %c0_i32_1 = arith.constant 0 : i32
    return %c0_i32, %c0_i32_0, %arg0 : i32, i32, i32
  }
}

</mosaic_0001>

<bundles_post_ra>
// kernel: tpu_custom_call.1
= control target key start
LH: loop header
LB: loop body
LE: loop exit
PB: predicated region body
PF: predicated region fallthrough
CT: control target
= control target key end

     0   :  { %10 = vsyncpa [#allocation6], 0  ;;  %s1617_s0 = inlined_call_operand.hbm [shape: f32[36], index: 0, kind: input, shape index: {}]   ;;  %s1618_s1 = inlined_call_operand.vmem [shape: f32[3], index: 1, kind: input, shape index: {}]   ;;  %s1619_s2 = inlined_call_operand.vmem [shape: f32[36], index: 2, kind: input, shape index: {}]   ;;  %s1620_s3 = inlined_call_operand.vmem [shape: f32[4], index: 3, kind: input, shape index: {}]   ;;  %s1621_s4 = inlined_call_operand.hbm [shape: f32[4,16,128], index: 4, kind: input, shape index: {}]   ;;  %s1622_s5 = inlined_call_operand.hbm [shape: f32[4,16,128], index: 5, kind: output, shape index: {}]  }
   0x1   :  { %11 = vsyncpa [#allocation7], 0 }
   0x2   :  { %12 = vsyncpa [#allocation10], 0 }
   0x3   :  { %13 = vsyncpa [#allocation4], 0  ;;  %s39_s20 = sshll.u32 %s1619_s2, 4  ;;  %s40_s20 = int_to_ptr.vmem [resolvable:$true] %s39_s20 }
   0x4   :  { %14 = vsyncpa [#allocation5], 0  ;;  %s817_s21 = scalar_lea.vmem %s40_s20, 16  ;;  %p822_p1 = scmp.lt.s32.totalorder %s40_s20, %s40_s20 }
   0x5   :  { %p818_p0 = scmp.ne.s32.totalorder %s40_s20, %s817_s21  ;;  %p823_p2 = scmp.lt.s32.totalorder %s817_s21, %s817_s21 }
   0x7   :  { %p824_p3 = por %p823_p2, %p822_p1 }
   0x9   :  { %p825_p4 = pnand %p824_p3, %p818_p0 }
   0xb   :  { %828 = shalt.err (!%p825_p4)
}
   0xc   :  { %s911_s22 = smov [#allocation9]   ;;  %s912_s23 = smov [#allocation3]  }
   0xd   :  { %42 = dma.vmem_to_smem %s40_s20, 16, %s911_s22, [#allocation10]  }
   0xe   :  { %22 = dma.hbm_to_smem %s1617_s0, 16, %s912_s23, [#allocation6]  }
   0xf   :  { %s29_s2 = sshll.u32 %s1618_s1, 4  ;;  %s49_s30 = sshll.u32 %s1620_s3, 4  ;;  %s30_s2 = int_to_ptr.vmem [resolvable:$true] %s29_s2  ;;  %s50_s30 = int_to_ptr.vmem [resolvable:$true] %s49_s30 }
  0x10   :  { %s837_s6 = scalar_lea.vmem %s30_s2, 16  ;;  %p842_p6 = scmp.lt.s32.totalorder %s30_s2, %s30_s2 }
  0x11   :  { %p838_p5 = scmp.ne.s32.totalorder %s30_s2, %s837_s6  ;;  %p843_p7 = scmp.lt.s32.totalorder %s837_s6, %s837_s6 }
  0x13   :  { %p844_p8 = por %p843_p7, %p842_p6 }
  0x15   :  { %p845_p9 = pnand %p844_p8, %p838_p5 }
  0x17   :  { %848 = shalt.err (!%p845_p9)
}
  0x18   :  { %s913_s7 = smov [#allocation8]   ;;  %s849_s0 = scalar_lea.vmem %s50_s30, 16 }
  0x19   :  { %32 = dma.vmem_to_smem %s30_s2, 16, %s913_s7, [#allocation7]  }
  0x1a   :  { %p850_p10 = scmp.ne.s32.totalorder %s50_s30, %s849_s0  ;;  %p854_p11 = scmp.lt.s32.totalorder %s50_s30, %s50_s30 }
  0x1b   :  { %p855_p12 = scmp.lt.s32.totalorder %s849_s0, %s849_s0 }
  0x1d   :  { %p856_p13 = por %p855_p12, %p854_p11 }
  0x1f   :  { %p857_p0 = pnand %p856_p13, %p850_p10 }
  0x21   :  { %860 = shalt.err (!%p857_p0)
}
  0x22   :  { %s914_s1 = smov [#allocation11]   ;;  %s915_s3 = smov [#allocation12]  }
  0x23   :  { %52 = dma.vmem_to_smem %s50_s30, 16, %s914_s1, [#allocation10]  }
  0x24   :  { %s58_s8 = sshll.u32 %s915_s3, 4  ;;  %s59_s8 = int_to_ptr.vmem [resolvable:$true] %s58_s8 }
  0x25   :  { %s869_s9 = scalar_lea.vmem %s59_s8, 1024  ;;  %p874_p2 = scmp.lt.s32.totalorder %s59_s8, %s59_s8 }
  0x26   :  { %p870_p1 = scmp.ne.s32.totalorder %s59_s8, %s869_s9  ;;  %p875_p3 = scmp.lt.s32.totalorder %s869_s9, %s869_s9 }
  0x28   :  { %p876_p4 = por %p875_p3, %p874_p2 }
  0x2a   :  { %p877_p5 = pnand %p876_p4, %p870_p1 }
  0x2c   :  { %880 = shalt.err (!%p877_p5)
}
  0x2d   :  { %s916_s10 = smov 128   ;;  %s917_s11 = smov 8  }
  0x2e   :  { %64 = dma.hbm_to_vmem [thread:$0]  %s1621_s4, 1024, %s59_s8, [#allocation4], %s916_s10, %s916_s10, %s917_s11  }
  0x2f   :  { %901 = dma.done.wait [#allocation6], 16  }
  0x30   :  { %902 = vsyncadd [#allocation6], 4294967280 }
  0x31   :  { %903 = dma.done.wait [#allocation7], 16  }
  0x32   :  { %904 = vsyncadd [#allocation7], 4294967280 }
  0x33   :  { %905 = dma.done.wait [#allocation10], 32  }
  0x34   :  { %906 = vsyncadd [#allocation10], 4294967264 }
  0x35   :  { %907 = dma.done.wait [#allocation4], 1024  }
  0x36   :  { %908 = vsyncadd [#allocation4], 4294966272 }
  0x37   :  { %80 = sfence }
  0x38   :  { %s968_s14 = sld [smem:[#allocation3]]  ;;  %v918_v0 = vmov 0.0   ;;  %v988_v1 = vld [vmem:[#allocation12] sm:$0xff]  ;;  %v162_v4 = vld [vmem:[#allocation12 + $0x8] sm:$0x3f]  ;;  %v998_v7 = vld [vmem:[#allocation12 + $0x10] sm:$0xff] }
  0x39   :  { %248 = vst [vmem:[#allocation2] sm:$0x3] %v918_v0  ;;  %253 = vst [vmem:[#allocation2 + $0x10] sm:$0x3] %v918_v0  ;;  %s970_s4 = sld [smem:[#allocation3 + $0x1]]  ;;  %v991_v3 = vld [vmem:[#allocation12 + $0x1] sm:$0xff] }
  0x3a   :  { %340 = vst [vmem:[#allocation2 + $0x18] sm:$0x3] %v918_v0  ;;  %345 = vst [vmem:[#allocation2 + $0x28] sm:$0x3] %v918_v0  ;;  %s972_s15 = sld [smem:[#allocation3 + $0x2]]  ;;  %v996_v6 = vld [vmem:[#allocation12 + $0x2] sm:$0xff] }
  0x3b   :  { %432 = vst [vmem:[#allocation2 + $0x30] sm:$0x3] %v918_v0  ;;  %437 = vst [vmem:[#allocation2 + $0x40] sm:$0x3] %v918_v0  ;;  %s974_s16 = sld [smem:[#allocation3 + $0x3]]  ;;  %v1004_v11 = vld [vmem:[#allocation12 + $0x11] sm:$0xff] }
  0x3c   :  { %s976_s17 = sld [smem:[#allocation3 + $0x4]]  ;;  %v169_v8 = vld [vmem:[#allocation12 + $0x9] sm:$0x3f]  ;;  %v1006_v12 = vld [vmem:[#allocation12 + $0x12] sm:$0xff]  ;;  %v1014_v21 = vld [vmem:[#allocation12 + $0x20] sm:$0xff] }
  0x3d   :  { %s978_s18 = sld [smem:[#allocation3 + $0x5]]  ;;  %v176_v13 = vld [vmem:[#allocation12 + $0xa] sm:$0x3f]  ;;  %v184_v17 = vld [vmem:[#allocation12 + $0x18] sm:$0x3f]  ;;  %v1017_v23 = vld [vmem:[#allocation12 + $0x21] sm:$0xff] }
  0x3e   :  { %s980_s19 = sld [smem:[#allocation3 + $0x6]]  ;;  %v163_v2 = vstv %s968_s14  ;;  %v191_v18 = vld [vmem:[#allocation12 + $0x19] sm:$0x3f]  ;;  %v206_v30 = vld [vmem:[#allocation12 + $0x28] sm:$0x3f]  ;;  %v1044_v40 = vld [vmem:[#allocation12 + $0x30] sm:$0xff] }
  0x3f   :  { %s982_s20 = sld [smem:[#allocation3 + $0x7]]  ;;  %v170_v5 = vstv %s970_s4  ;;  %v164_v14 = vmul.f32 %v163_v2, %v988_v1  ;;  %v165_v16 = vmul.f32 %v163_v2, %v162_v4  ;;  %v198_v25 = vld [vmem:[#allocation12 + $0x1a] sm:$0x3f]  ;;  %v213_v31 = vld [vmem:[#allocation12 + $0x29] sm:$0x3f]  ;;  %v1047_v42 = vld [vmem:[#allocation12 + $0x31] sm:$0xff] }
  0x40   :  { %s984_s21 = sld [smem:[#allocation3 + $0x8]]  ;;  %v177_v9 = vstv %s972_s15  ;;  %v171_v19 = vmul.f32 %v170_v5, %v991_v3  ;;  %v172_v24 = vmul.f32 %v170_v5, %v169_v8  ;;  %v1031_v33 = vld [vmem:[#allocation12 + $0x22] sm:$0xff]  ;;  %v220_v37 = vld [vmem:[#allocation12 + $0x2a] sm:$0x3f]  ;;  %v228_v48 = vld [vmem:[#allocation12 + $0x38] sm:$0x3f] }
  0x41   :  { %s986_s22 = sld [smem:[#allocation3 + $0x9]]  ;;  %v185_v10 = vstv %s974_s16  ;;  %v178_v26 = vmul.f32 %v177_v9, %v996_v6  ;;  %v179_v29 = vmul.f32 %v177_v9, %v176_v13  ;;  %v235_v49 = vld [vmem:[#allocation12 + $0x39] sm:$0x3f]  ;;  %v256_v60 = vld [vmem:[#allocation12 + $0x8] sm:$0x3f] }
  0x42   :  { %s993_s23 = sld [smem:[#allocation3 + $0xa]]  ;;  %v192_v15 = vstv %s976_s17  ;;  %v1023_v27 = vmul.f32 %v185_v10, %v998_v7  ;;  %v187_v35 = vmul.f32 %v185_v10, %v184_v17  ;;  %v1067_v52 = vld [vmem:[#allocation12 + $0x32] sm:$0xff]  ;;  %v242_v58 = vld [vmem:[#allocation12 + $0x3a] sm:$0x3f]  ;;  %v263_v9 = vld [vmem:[#allocation12 + $0x9] sm:$0x3f] }
  0x43   :  { %s1000_s24 = sld [smem:[#allocation3 + $0xb]]  ;;  %v199_v20 = vstv %s978_s18  ;;  %v1029_v32 = vmul.f32 %v192_v15, %v1004_v11  ;;  %v1034_v36 = vmul.f32 %v192_v15, %v191_v18  ;;  %v270_v10 = vld [vmem:[#allocation12 + $0xa] sm:$0x3f] }
  0x44   :  { %s1008_s25 = sld [smem:[#allocation8]]  ;;  %v207_v22 = vstv %s980_s19  ;;  %v1039_v38 = vmul.f32 %v199_v20, %v1006_v12  ;;  %v1049_v43 = vmul.f32 %v199_v20, %v198_v25 }
  0x45   :  { %s1019_s26 = sld [smem:[#allocation3 + $0xc]]  ;;  %v214_v28 = vstv %s982_s20  ;;  %v1042_v39 = vmul.f32 %v207_v22, %v1014_v21  ;;  %v1057_v46 = vmul.f32 %v207_v22, %v206_v30  ;;  %v277_v22 = vld [vmem:[#allocation12 + $0x18] sm:$0x3f] }
  0x46   :  { %s1026_s27 = sld [smem:[#allocation3 + $0xd]]  ;;  %v221_v34 = vstv %s984_s21  ;;  %v1054_v44 = vmul.f32 %v214_v28, %v1017_v23  ;;  %v1059_v47 = vmul.f32 %v214_v28, %v213_v31 }
  0x47   :  { %s1036_s2 = sld [smem:[#allocation3 + $0xe]]  ;;  %v229_v41 = vstv %s986_s22  ;;  %v1065_v51 = vmul.f32 %v221_v34, %v1031_v33  ;;  %v1070_v54 = vmul.f32 %v221_v34, %v220_v37 }
  0x48   :  { %s1051_s28 = sld [smem:[#allocation3 + $0xf]]  ;;  %v236_v45 = vstv %s993_s23  ;;  %v1075_v56 = vmul.f32 %v229_v41, %v1044_v40  ;;  %v1083_v62 = vmul.f32 %v229_v41, %v228_v48  ;;  %v291_v41 = vld [vmem:[#allocation12 + $0x1a] sm:$0x3f] }
  0x49   :  { %s1061_s29 = sld [smem:[#allocation3 + $0x10]]  ;;  %v243_v53 = vstv %s1000_s24  ;;  %v1081_v61 = vmul.f32 %v236_v45, %v1047_v42  ;;  %v1085_v63 = vmul.f32 %v236_v45, %v235_v49  ;;  %v298_v45 = vld [vmem:[#allocation12 + $0x28] sm:$0x3f] }
  0x4a   :  { %v160_v50 = vstv %s1008_s25  ;;  %s1072_s30 = sld [smem:[#allocation3 + $0x11]]  ;;  %v1091_v4 = vmul.f32 %v243_v53, %v1067_v52  ;;  %v1096_v13 = vmul.f32 %v243_v53, %v242_v58  ;;  %v305_v58 = vld [vmem:[#allocation12 + $0x29] sm:$0x3f] }
  0x4b   :  { %v166_v55 = vadd.f32 %v164_v14, %v160_v50  ;;  %v167_v57 = vadd.f32 %v165_v16, %v160_v50  ;;  %s1077_s6 = sld [smem:[#allocation3 + $0x12]]  ;;  %v257_v59 = vstv %s1019_s26 }
  0x4c   :  { %s1087_s7 = sld [smem:[#allocation3 + $0x13]]  ;;  %v264_v0 = vstv %s1026_s27  ;;  %v258_v14 = vmul.f32 %v257_v59, %v988_v1  ;;  %v259_v16 = vmul.f32 %v257_v59, %v256_v60  ;;  %v312_v59 = vld [vmem:[#allocation12 + $0x2a] sm:$0x3f] }
  0x4d   :  { %v173_v2 = vadd.f32 %v171_v19, %v166_v55  ;;  %v174_v5 = vadd.f32 %v172_v24, %v167_v57  ;;  %s1093_s0 = sld [smem:[#allocation3 + $0x14]]  ;;  %v271_v8 = vstv %s1036_s2  ;;  %v265_v19 = vmul.f32 %v264_v0, %v991_v3  ;;  %v284_v24 = vld [vmem:[#allocation12 + $0x19] sm:$0x3f] }
  0x4e   :  { %s1098_s1 = sld [smem:[#allocation3 + $0x15]]  ;;  %v278_v15 = vstv %s1051_s28  ;;  %v1109_v25 = vmul.f32 %v271_v8, %v996_v6  ;;  %v266_v30 = vmul.f32 %v264_v0, %v263_v9  ;;  %v1112_v31 = vmul.f32 %v271_v8, %v270_v10 }
  0x4f   :  { %v180_v17 = vadd.f32 %v178_v26, %v173_v2  ;;  %v181_v18 = vadd.f32 %v179_v29, %v174_v5  ;;  %s1102_s3 = sld [smem:[#allocation3 + $0x16]]  ;;  %v285_v20 = vstv %s1061_s29  ;;  %v1118_v34 = vmul.f32 %v278_v15, %v998_v7 }
  0x50   :  { %s1106_s8 = sld [smem:[#allocation3 + $0x17]]  ;;  %v292_v28 = vstv %s1072_s30  ;;  %v1122_v48 = vmul.f32 %v285_v20, %v1004_v11  ;;  %v1125_v50 = vmul.f32 %v278_v15, %v277_v22  ;;  %v1127_v53 = vmul.f32 %v285_v20, %v284_v24 }
  0x51   :  { %v188_v26 = vadd.f32 %v1023_v27, %v180_v17  ;;  %v189_v29 = vadd.f32 %v187_v35, %v181_v18  ;;  %s1115_s9 = sld [smem:[#allocation8 + $0x1]]  ;;  %v299_v37 = vstv %s1077_s6  ;;  %v1134_v55 = vmul.f32 %v292_v28, %v1006_v12 }
  0x52   :  { %v306_v49 = vstv %s1087_s7  ;;  %s1129_s12 = sld [smem:[#allocation3 + $0x18]]  ;;  %v1140_v60 = vmul.f32 %v299_v37, %v1014_v21  ;;  %v1143_v2 = vmul.f32 %v292_v28, %v291_v41  ;;  %v1145_v5 = vmul.f32 %v299_v37, %v298_v45  ;;  %v326_v28 = vld [vmem:[#allocation12 + $0x39] sm:$0x3f] }
  0x53   :  { %v195_v27 = vadd.f32 %v1029_v32, %v188_v26  ;;  %v196_v35 = vadd.f32 %v1034_v36, %v189_v29  ;;  %v313_v57 = vstv %s1093_s0  ;;  %s1137_s13 = sld [smem:[#allocation3 + $0x19]]  ;;  %v1152_v8 = vmul.f32 %v306_v49, %v1017_v23  ;;  %v333_v41 = vld [vmem:[#allocation12 + $0x3a] sm:$0x3f] }
  0x54   :  { %v320_v0 = vstv %s1098_s1  ;;  %s1147_s14 = sld [smem:[#allocation3 + $0x1a]]  ;;  %v1158_v10 = vmul.f32 %v313_v57, %v1031_v33  ;;  %v1163_v17 = vmul.f32 %v306_v49, %v305_v58  ;;  %v1165_v18 = vmul.f32 %v313_v57, %v312_v59 }
  0x55   :  { %v202_v32 = vadd.f32 %v1039_v38, %v195_v27  ;;  %v203_v36 = vadd.f32 %v1049_v43, %v196_v35  ;;  %v327_v9 = vstv %s1102_s3  ;;  %s1155_s4 = sld [smem:[#allocation3 + $0x1b]]  ;;  %v1161_v15 = vmul.f32 %v320_v0, %v1044_v40  ;;  %v319_v38 = vld [vmem:[#allocation12 + $0x38] sm:$0x3f] }
  0x56   :  { %s1167_s15 = sld [smem:[#allocation3 + $0x1c]]  ;;  %v334_v24 = vstv %s1106_s8  ;;  %v1176_v29 = vmul.f32 %v327_v9, %v1047_v42  ;;  %v1191_v57 = vmul.f32 %v327_v9, %v326_v28 }
  0x57   :  { %v210_v43 = vadd.f32 %v1042_v39, %v202_v32  ;;  %v211_v20 = vadd.f32 %v1057_v46, %v203_v36  ;;  %v254_v22 = vstv %s1115_s9  ;;  %s1173_s16 = sld [smem:[#allocation3 + $0x1d]]  ;;  %v1183_v46 = vmul.f32 %v320_v0, %v319_v38 }
  0x58   :  { %v260_v26 = vadd.f32 %v258_v14, %v254_v22  ;;  %v261_v37 = vadd.f32 %v259_v16, %v254_v22  ;;  %s1178_s17 = sld [smem:[#allocation3 + $0x1e]]  ;;  %v349_v45 = vstv %s1129_s12  ;;  %v1189_v35 = vmul.f32 %v334_v24, %v1067_v52 }
  0x59   :  { %v217_v39 = vadd.f32 %v1054_v44, %v210_v43  ;;  %v218_v49 = vadd.f32 %v1059_v47, %v211_v20  ;;  %s1185_s18 = sld [smem:[#allocation3 + $0x1f]]  ;;  %v356_v27 = vstv %s1137_s13  ;;  %v1197_v58 = vmul.f32 %v334_v24, %v333_v41  ;;  %v362_v41 = vld [vmem:[#allocation12 + $0xa] sm:$0x3f] }
  0x5a   :  { %v267_v14 = vadd.f32 %v265_v19, %v260_v26  ;;  %v268_v16 = vadd.f32 %v266_v30, %v261_v37  ;;  %s1193_s19 = sld [smem:[#allocation3 + $0x20]]  ;;  %v350_v19 = vmul.f32 %v349_v45, %v988_v1  ;;  %v363_v0 = vstv %s1147_s14 }
  0x5b   :  { %v224_v44 = vadd.f32 %v1065_v51, %v217_v39  ;;  %v225_v47 = vadd.f32 %v1070_v54, %v218_v49  ;;  %s1199_s20 = sld [smem:[#allocation3 + $0x21]]  ;;  %v357_v51 = vmul.f32 %v356_v27, %v991_v3  ;;  %v370_v36 = vstv %s1155_s4 }
  0x5c   :  { %v274_v30 = vadd.f32 %v1109_v25, %v267_v14  ;;  %v275_v59 = vadd.f32 %v1112_v31, %v268_v16  ;;  %s1206_s21 = sld [smem:[#allocation3 + $0x22]]  ;;  %v377_v9 = vstv %s1167_s15 }
  0x5d   :  { %v232_v54 = vadd.f32 %v1075_v56, %v224_v44  ;;  %v233_v32 = vadd.f32 %v1083_v62, %v225_v47  ;;  %s1212_s22 = sld [smem:[#allocation3 + $0x23]]  ;;  %v384_v31 = vstv %s1173_s16  ;;  %v364_v62 = vmul.f32 %v363_v0, %v996_v6  ;;  %v376_v44 = vld [vmem:[#allocation12 + $0x19] sm:$0x3f] }
  0x5e   :  { %v281_v1 = vadd.f32 %v1118_v34, %v274_v30  ;;  %v282_v25 = vadd.f32 %v1125_v50, %v275_v59  ;;  %s1218_s23 = sld [smem:[#allocation8 + $0x2]]  ;;  %v391_v38 = vstv %s1178_s17  ;;  %v1229_v34 = vmul.f32 %v370_v36, %v998_v7  ;;  %v390_v59 = vld [vmem:[#allocation12 + $0x28] sm:$0x3f] }
  0x5f   :  { %v239_v3 = vadd.f32 %v1081_v61, %v232_v54  ;;  %v240_v56 = vadd.f32 %v1085_v63, %v233_v32  ;;  %v398_v43 = vstv %s1185_s18  ;;  %v1232_v50 = vmul.f32 %v377_v9, %v1004_v11  ;;  %s1242_s24 = sld [smem:[#allocation9]]  ;;  %v397_v32 = vld [vmem:[#allocation12 + $0x29] sm:$0x3f] }
  0x60   :  { %v288_v20 = vadd.f32 %v1122_v48, %v281_v1  ;;  %v289_v22 = vadd.f32 %v1127_v53, %v282_v25  ;;  %v1237_v63 = vmul.f32 %v384_v31, %v1006_v12  ;;  %v1240_v6 = vmul.f32 %v391_v38, %v1014_v21  ;;  %v355_v53 = vld [vmem:[#allocation12 + $0x9] sm:$0x3f]  ;;  %s1252_s25 = sld [smem:[#allocation9 + $0x1]] }
  0x61   :  { %v246_v61 = vadd.f32 %v1091_v4, %v239_v3  ;;  %v247_v24 = vadd.f32 %v1096_v13, %v240_v56  ;;  %v1249_v48 = vmul.f32 %v398_v43, %v1017_v23  ;;  %v405_v4 = vstv %s1193_s19  ;;  %v348_v13 = vld [vmem:[#allocation12 + $0x8] sm:$0x3f]  ;;  %s1258_s26 = sld [smem:[#allocation9 + $0x2]] }
  0x62   :  { %v295_v7 = vadd.f32 %v1134_v55, %v288_v20  ;;  %v296_v11 = vadd.f32 %v1143_v2, %v289_v22  ;;  %v412_v28 = vstv %s1199_s20  ;;  %v419_v26 = vstv %s1206_s21  ;;  %s1264_s27 = sld [smem:[#allocation9 + $0xc]]  ;;  %v404_v56 = vld [vmem:[#allocation12 + $0x2a] sm:$0x3f] }
  0x63   :  { %v1254_v12 = vmax.f32 %v246_v61, 0.0  ;;  %v250_v21 = vmax.f32 %v247_v24, 0.0  ;;  %v426_v23 = vstv %s1212_s22  ;;  %v1268_v49 = vmul.f32 %v405_v4, %v1031_v33  ;;  %s1272_s2 = sld [smem:[#allocation9 + $0xd]]  ;;  %v383_v33 = vld [vmem:[#allocation12 + $0x1a] sm:$0x3f] }
  0x64   :  { %v302_v55 = vadd.f32 %v1140_v60, %v295_v7  ;;  %v303_v2 = vadd.f32 %v1145_v5, %v296_v11  ;;  %v346_v37 = vstv %s1218_s23  ;;  %v351_v14 = vmul.f32 %v349_v45, %v348_v13  ;;  %v369_v60 = vld [vmem:[#allocation12 + $0x18] sm:$0x3f]  ;;  %s1284_s28 = sld [smem:[#allocation9 + $0xe]] }
  0x65   :  { %251 = vst [vmem:[#allocation2 + $0x2] sm:$0xff] %v1254_v12  ;;  %252 = vst [vmem:[#allocation2 + $0xa] sm:$0x3f] %v250_v21  ;;  %v352_v39 = vadd.f32 %v350_v19, %v346_v37  ;;  %v358_v16 = vmul.f32 %v356_v27, %v355_v53  ;;  %v1277_v30 = vmul.f32 %v412_v28, %v1044_v40  ;;  %s1291_s29 = sld [smem:[#allocation9 + $0x18]]  ;;  %v418_v11 = vld [vmem:[#allocation12 + $0x39] sm:$0x3f] }
  0x66   :  { %v309_v5 = vadd.f32 %v1152_v8, %v302_v55  ;;  %v310_v47 = vadd.f32 %v1163_v17, %v303_v2  ;;  %v1282_v19 = vmul.f32 %v419_v26, %v1047_v42  ;;  %v1289_v27 = vmul.f32 %v426_v23, %v1067_v52  ;;  %s1295_s30 = sld [smem:[#allocation11]]  ;;  %v425_v13 = vld [vmem:[#allocation12 + $0x3a] sm:$0x3f] }
  0x67   :  { %v359_v45 = vadd.f32 %v357_v51, %v352_v39  ;;  %v353_v54 = vadd.f32 %v351_v14, %v346_v37  ;;  %v365_v8 = vmul.f32 %v363_v0, %v362_v41  ;;  %v372_v17 = vmul.f32 %v370_v36, %v369_v60  ;;  %v411_v0 = vld [vmem:[#allocation12 + $0x38] sm:$0x3f]  ;;  %s1297_s6 = sld [smem:[#allocation9 + $0x19]] }
  0x68   :  { %v316_v40 = vadd.f32 %v1158_v10, %v309_v5  ;;  %v317_v42 = vadd.f32 %v1165_v18, %v310_v47  ;;  %v379_v1 = vmul.f32 %v377_v9, %v376_v44  ;;  %v386_v52 = vmul.f32 %v384_v31, %v383_v33  ;;  %s1305_s7 = sld [smem:[#allocation9 + $0x1a]] }
  0x69   :  { %v366_v51 = vadd.f32 %v364_v62, %v359_v45  ;;  %v360_v25 = vadd.f32 %v358_v16, %v353_v54  ;;  %v393_v3 = vmul.f32 %v391_v38, %v390_v59  ;;  %v1303_v22 = vmul.f32 %v398_v43, %v397_v32  ;;  %s1311_s0 = sld [smem:[#allocation9 + $0x3]] }
  0x6a   :  { %v323_v20 = vadd.f32 %v1161_v15, %v316_v40  ;;  %v324_v10 = vadd.f32 %v1183_v46, %v317_v42  ;;  %v441_v18 = vstv %s1242_s24  ;;  %v448_v38 = vstv %s1252_s25  ;;  %s1321_s1 = sld [smem:[#allocation9 + $0x4]] }
  0x6b   :  { %v373_v36 = vadd.f32 %v1229_v34, %v366_v51  ;;  %v367_v9 = vadd.f32 %v365_v8, %v360_v25  ;;  %v442_v31 = vmul.f32 %v441_v18, %v1254_v12  ;;  %v407_v46 = vmul.f32 %v405_v4, %v404_v56  ;;  %s1326_s3 = sld [smem:[#allocation9 + $0x5]] }
  0x6c   :  { %v330_v62 = vadd.f32 %v1176_v29, %v323_v20  ;;  %v331_v15 = vadd.f32 %v1191_v57, %v324_v10  ;;  %v1315_v43 = vmul.f32 %v412_v28, %v411_v0  ;;  %v1317_v61 = vld [vmem:[#allocation2 + $0x1] sm:$0xff]  ;;  %v455_v53 = vstv %s1258_s26  ;;  %s1332_s8 = sld [smem:[#allocation9 + $0xf]]  ;;  %v1336_v41 = vld [vmem:[#allocation2 + $0xa] sm:$0xff] }
  0x6d   :  { %v1319_v24 = vld [vmem:[#allocation2] sm:$0xff]  ;;  %v380_v34 = vadd.f32 %v1232_v50, %v373_v36  ;;  %v374_v7 = vadd.f32 %v372_v17, %v367_v9  ;;  %v449_v29 = vmul.f32 %v448_v38, %v1317_v61  ;;  %v438_v21 = vstv %s1295_s30  ;;  %s1338_s9 = sld [smem:[#allocation9 + $0x10]]  ;;  %v1352_v5 = vld [vmem:[#allocation2 + $0x9] sm:$0xff] }
  0x6e   :  { %v337_v57 = vadd.f32 %v1189_v35, %v330_v62  ;;  %v338_v4 = vadd.f32 %v1197_v58, %v331_v15  ;;  %v462_v28 = vstv %s1264_s27  ;;  %v444_v2 = vadd.f32 %v442_v31, %v438_v21  ;;  %s1348_s12 = sld [smem:[#allocation9 + $0x11]]  ;;  %v1366_v54 = vld [vmem:[#allocation2 + $0x8] sm:$0xff] }
  0x6f   :  { %v387_v50 = vadd.f32 %v1237_v63, %v380_v34  ;;  %v381_v55 = vadd.f32 %v379_v1, %v374_v7  ;;  %v456_v37 = vmul.f32 %v455_v53, %v1319_v24  ;;  %v421_v39 = vmul.f32 %v419_v26, %v418_v11  ;;  %s1354_s13 = sld [smem:[#allocation9 + $0x1b]] }
  0x70   :  { %v1340_v35 = vmax.f32 %v337_v57, 0.0  ;;  %v342_v58 = vmax.f32 %v338_v4, 0.0  ;;  %v1346_v14 = vmul.f32 %v426_v23, %v425_v13  ;;  %v451_v60 = vadd.f32 %v449_v29, %v444_v2  ;;  %s1363_s14 = sld [smem:[#allocation11 + $0x1]] }
  0x71   :  { %v394_v63 = vadd.f32 %v1240_v6, %v387_v50  ;;  %v388_v16 = vadd.f32 %v386_v52, %v381_v55  ;;  %v469_v44 = vstv %s1272_s2  ;;  %v476_v23 = vstv %s1284_s28  ;;  %s1368_s4 = sld [smem:[#allocation9 + $0x1c]] }
  0x72   :  { %343 = vst [vmem:[#allocation2 + $0x1a] sm:$0xff] %v1340_v35  ;;  %344 = vst [vmem:[#allocation2 + $0x22] sm:$0x3f] %v342_v58  ;;  %v463_v26 = vmul.f32 %v462_v28, %v1340_v35  ;;  %v483_v47 = vstv %s1291_s29  ;;  %v443_v6 = vmul.f32 %v441_v18, %v1336_v41  ;;  %v458_v45 = vadd.f32 %v456_v37, %v451_v60  ;;  %s1373_s15 = sld [smem:[#allocation9 + $0x1d]] }
  0x73   :  { %v401_v33 = vadd.f32 %v1249_v48, %v394_v63  ;;  %v395_v59 = vadd.f32 %v393_v3, %v388_v16  ;;  %v509_v8 = vstv %s1311_s0  ;;  %v490_v32 = vstv %s1297_s6  ;;  %s1388_s16 = sld [smem:[#allocation9 + $0x6]] }
  0x74   :  { %v445_v40 = vadd.f32 %v443_v6, %v438_v21  ;;  %v450_v42 = vmul.f32 %v448_v38, %v1352_v5  ;;  %v516_v17 = vstv %s1321_s1  ;;  %v497_v51 = vstv %s1305_s7  ;;  %s1399_s17 = sld [smem:[#allocation9 + $0x7]] }
  0x75   :  { %v408_v48 = vadd.f32 %v1268_v49, %v401_v33  ;;  %v402_v1 = vadd.f32 %v1303_v22, %v395_v59  ;;  %v510_v25 = vmul.f32 %v509_v8, %v1254_v12  ;;  %v457_v3 = vmul.f32 %v455_v53, %v1366_v54  ;;  %s1409_s18 = sld [smem:[#allocation9 + $0x8]] }
  0x76   :  { %v452_v52 = vadd.f32 %v450_v42, %v445_v40  ;;  %v523_v56 = vstv %s1326_s3  ;;  %v530_v0 = vstv %s1332_s8  ;;  %v465_v18 = vadd.f32 %v463_v26, %v458_v45  ;;  %s1418_s19 = sld [smem:[#allocation9 + $0x12]]  ;;  %s919_s3 = smov [#allocation13]  }
  0x77   :  { %v415_v20 = vadd.f32 %v1277_v30, %v408_v48  ;;  %v409_v10 = vadd.f32 %v407_v46, %v402_v1  ;;  %v517_v36 = vmul.f32 %v516_v17, %v1317_v61  ;;  %v506_v22 = vstv %s1363_s14  ;;  %s1421_s20 = sld [smem:[#allocation11 + $0x2]]  ;;  %s718_s8 = sshll.u32 %s919_s3, 4  ;;  %s719_s8 = int_to_ptr.vmem [resolvable:$true] %s718_s8 }
  0x78   :  { %v459_v49 = vadd.f32 %v457_v3, %v452_v52  ;;  %v524_v9 = vmul.f32 %v523_v56, %v1319_v24  ;;  %v537_v31 = vstv %s1338_s9  ;;  %v512_v34 = vadd.f32 %v510_v25, %v506_v22  ;;  %s1435_s21 = sld [smem:[#allocation9 + $0x13]]  ;;  %s881_s9 = scalar_lea.vmem %s719_s8, 1024 }
  0x79   :  { %v422_v38 = vadd.f32 %v1282_v19, %v415_v20  ;;  %v416_v62 = vadd.f32 %v1315_v43, %v409_v10  ;;  %v1392_v30 = vld [vmem:[#allocation2 + $0x19] sm:$0xff]  ;;  %v1396_v46 = vld [vmem:[#allocation2 + $0x22] sm:$0xff]  ;;  %v531_v7 = vmul.f32 %v530_v0, %v1340_v35  ;;  %v544_v43 = vstv %s1348_s12  ;;  %s1439_s22 = sld [smem:[#allocation9 + $0x1e]]  ;;  %p882_p6 = scmp.ne.s32.totalorder %s719_s8, %s881_s9 }
  0x7a   :  { %v1394_v15 = vld [vmem:[#allocation2 + $0x18] sm:$0xff]  ;;  %v470_v11 = vmul.f32 %v469_v44, %v1392_v30  ;;  %v464_v19 = vmul.f32 %v462_v28, %v1396_v46  ;;  %v551_v13 = vstv %s1354_s13  ;;  %v1413_v4 = vld [vmem:[#allocation2 + $0x21] sm:$0xff]  ;;  %v558_v50 = vstv %s1368_s4  ;;  %s1445_s23 = sld [smem:[#allocation9 + $0x14]]  ;;  %p886_p7 = scmp.lt.s32.totalorder %s719_s8, %s719_s8 }
  0x7b   :  { %v429_v29 = vadd.f32 %v1289_v27, %v422_v38  ;;  %v423_v53 = vadd.f32 %v421_v39, %v416_v62  ;;  %v477_v57 = vmul.f32 %v476_v23, %v1394_v15  ;;  %v1415_v21 = vld [vmem:[#allocation2 + $0x20] sm:$0xff]  ;;  %v519_v2 = vadd.f32 %v517_v36, %v512_v34  ;;  %s1462_s24 = sld [smem:[#allocation9 + $0x1f]]  ;;  %p887_p8 = scmp.lt.s32.totalorder %s881_s9, %s881_s9 }
  0x7c   :  { %v472_v55 = vadd.f32 %v470_v11, %v465_v18  ;;  %v466_v28 = vadd.f32 %v464_v19, %v459_v49  ;;  %v565_v37 = vstv %s1373_s15  ;;  %v538_v39 = vmul.f32 %v537_v31, %v1392_v30  ;;  %s1498_s25 = sld [smem:[#allocation9 + $0x20]] }
  0x7d   :  { %v1423_v58 = vmax.f32 %v429_v29, 0.0  ;;  %v430_v27 = vadd.f32 %v1346_v14, %v423_v53  ;;  %v511_v63 = vmul.f32 %v509_v8, %v1336_v41  ;;  %v471_v16 = vmul.f32 %v469_v44, %v1413_v4  ;;  %s1510_s26 = sld [smem:[#allocation9 + $0x9]]  ;;  %p888_p9 = por %p887_p8, %p886_p7 }
  0x7e   :  { %v478_v60 = vmul.f32 %v476_v23, %v1415_v21  ;;  %v526_v26 = vadd.f32 %v524_v9, %v519_v2  ;;  %v545_v6 = vmul.f32 %v544_v43, %v1394_v15  ;;  %v479_v33 = vadd.f32 %v477_v57, %v472_v55  ;;  %s1520_s27 = sld [smem:[#allocation9 + $0xa]] }
  0x7f   :  { %435 = vst [vmem:[#allocation2 + $0x32] sm:$0xff] %v1423_v58  ;;  %v434_v14 = vmax.f32 %v430_v27, 0.0  ;;  %v513_v59 = vadd.f32 %v511_v63, %v506_v22  ;;  %v518_v45 = vmul.f32 %v516_v17, %v1352_v5  ;;  %v484_v44 = vmul.f32 %v483_v47, %v1423_v58  ;;  %s1525_s2 = sld [smem:[#allocation11 + $0x3]]  ;;  %p889_p10 = pnand %p888_p9, %p882_p6 }
  0x80   :  { %v473_v23 = vadd.f32 %v471_v16, %v466_v28  ;;  %v533_v8 = vadd.f32 %v531_v7, %v526_v26  ;;  %v525_v40 = vmul.f32 %v523_v56, %v1366_v54  ;;  %v552_v42 = vmul.f32 %v551_v13, %v1423_v58  ;;  %s1531_s28 = sld [smem:[#allocation9 + $0xb]] }
  0x81   :  { %436 = vst [vmem:[#allocation2 + $0x3a] sm:$0x3f] %v434_v14  ;;  %v520_v17 = vadd.f32 %v518_v45, %v513_v59  ;;  %v532_v48 = vmul.f32 %v530_v0, %v1396_v46  ;;  %v578_v1 = vstv %s1388_s16  ;;  %v575_v52 = vstv %s1421_s20  ;;  %s1536_s29 = sld [smem:[#allocation9 + $0x15]] }
  0x82   :  { %v540_v25 = vadd.f32 %v538_v39, %v533_v8  ;;  %v579_v3 = vmul.f32 %v578_v1, %v1254_v12  ;;  %v585_v20 = vstv %s1399_s17  ;;  %v592_v18 = vstv %s1409_s18  ;;  %s1547_s30 = sld [smem:[#allocation9 + $0x16]] }
  0x83   :  { %v527_v56 = vadd.f32 %v525_v40, %v520_v17  ;;  %v586_v10 = vmul.f32 %v585_v20, %v1317_v61  ;;  %v599_v36 = vstv %s1418_s19  ;;  %v480_v49 = vadd.f32 %v478_v60, %v473_v23  ;;  %s1562_s6 = sld [smem:[#allocation9 + $0x17]] }
  0x84   :  { %v547_v0 = vadd.f32 %v545_v6, %v540_v25  ;;  %v581_v22 = vadd.f32 %v579_v3, %v575_v52  ;;  %v593_v9 = vmul.f32 %v592_v18, %v1319_v24  ;;  %v486_v38 = vadd.f32 %v484_v44, %v479_v33  ;;  %s1564_s7 = sld [smem:[#allocation9 + $0x21]] }
  0x85   :  { %v534_v62 = vadd.f32 %v532_v48, %v527_v56  ;;  %v539_v34 = vmul.f32 %v537_v31, %v1413_v4  ;;  %v546_v7 = vmul.f32 %v544_v43, %v1415_v21  ;;  %v600_v57 = vmul.f32 %v599_v36, %v1340_v35  ;;  %s1571_s0 = sld [smem:[#allocation9 + $0x22]] }
  0x86   :  { %v1473_v11 = vld [vmem:[#allocation2 + $0x31] sm:$0xff]  ;;  %v554_v29 = vadd.f32 %v552_v42, %v547_v0  ;;  %v588_v53 = vadd.f32 %v586_v10, %v581_v22  ;;  %v606_v55 = vstv %s1435_s21  ;;  %v620_v2 = vstv %s1439_s22  ;;  %s1587_s1 = sld [smem:[#allocation9 + $0x23]] }
  0x87   :  { %v1475_v19 = vld [vmem:[#allocation2 + $0x30] sm:$0xff]  ;;  %v491_v28 = vmul.f32 %v490_v32, %v1473_v11  ;;  %v559_v43 = vmul.f32 %v558_v50, %v1473_v11  ;;  %v541_v16 = vadd.f32 %v539_v34, %v534_v62  ;;  %v613_v26 = vstv %s1445_s23 }
  0x88   :  { %v498_v31 = vmul.f32 %v497_v51, %v1475_v19  ;;  %v1491_v27 = vld [vmem:[#allocation2 + $0x3a] sm:$0xff]  ;;  %v566_v63 = vmul.f32 %v565_v37, %v1475_v19  ;;  %v595_v60 = vadd.f32 %v593_v9, %v588_v53  ;;  %v607_v33 = vmul.f32 %v606_v55, %v1392_v30 }
  0x89   :  { %v1493_v39 = vld [vmem:[#allocation2 + $0x39] sm:$0xff]  ;;  %v493_v6 = vadd.f32 %v491_v28, %v486_v38  ;;  %v485_v14 = vmul.f32 %v483_v47, %v1491_v27  ;;  %v614_v59 = vmul.f32 %v613_v26, %v1394_v15  ;;  %v561_v44 = vadd.f32 %v559_v43, %v554_v29 }
  0x8a   :  { %v1512_v45 = vld [vmem:[#allocation2 + $0x38] sm:$0xff]  ;;  %v548_v23 = vadd.f32 %v546_v7, %v541_v16  ;;  %v553_v8 = vmul.f32 %v551_v13, %v1491_v27  ;;  %v621_v47 = vmul.f32 %v620_v2, %v1423_v58  ;;  %v492_v17 = vmul.f32 %v490_v32, %v1493_v39 }
  0x8b   :  { %v500_v40 = vadd.f32 %v498_v31, %v493_v6  ;;  %v487_v42 = vadd.f32 %v485_v14, %v480_v49  ;;  %v602_v48 = vadd.f32 %v600_v57, %v595_v60  ;;  %v568_v25 = vadd.f32 %v566_v63, %v561_v44 }
  0x8c   :  { %v555_v3 = vadd.f32 %v553_v8, %v548_v23  ;;  %v560_v13 = vmul.f32 %v558_v50, %v1493_v39  ;;  %v627_v56 = vstv %s1462_s24  ;;  %v499_v32 = vmul.f32 %v497_v51, %v1512_v45 }
  0x8d   :  { %v502_v10 = vmax.f32 %v500_v40, 0.0  ;;  %v494_v49 = vadd.f32 %v492_v17, %v487_v42  ;;  %v609_v0 = vadd.f32 %v607_v33, %v602_v48  ;;  %v570_v22 = vmax.f32 %v568_v25, 0.0 }
  0x8e   :  { %v562_v9 = vadd.f32 %v560_v13, %v555_v3  ;;  %v567_v38 = vmul.f32 %v565_v37, %v1512_v45  ;;  %v580_v50 = vmul.f32 %v578_v1, %v1336_v41  ;;  %v628_v51 = vmul.f32 %v627_v56, %v1473_v11 }
  0x8f   :  { %504 = vst [vmem:[#allocation13] sm:$0xff] %v502_v10  ;;  %v501_v62 = vadd.f32 %v499_v32, %v494_v49  ;;  %v616_v34 = vadd.f32 %v614_v59, %v609_v0  ;;  %573 = vst [vmem:[#allocation13 + $0x10] sm:$0xff] %v570_v22  ;;  %v634_v29 = vstv %s1498_s25  ;;  %v587_v1 = vmul.f32 %v585_v20, %v1352_v5 }
  0x90   :  { %v569_v7 = vadd.f32 %v567_v38, %v562_v9  ;;  %v582_v37 = vadd.f32 %v580_v50, %v575_v52  ;;  %v635_v28 = vmul.f32 %v634_v29, %v1475_v19  ;;  %v594_v63 = vmul.f32 %v592_v18, %v1366_v54 }
  0x91   :  { %v503_v53 = vmax.f32 %v501_v62, 0.0  ;;  %v623_v57 = vadd.f32 %v621_v47, %v616_v34  ;;  %v601_v16 = vmul.f32 %v599_v36, %v1396_v46  ;;  %v644_v20 = vstv %s1525_s2 }
  0x92   :  { %v571_v31 = vmax.f32 %v569_v7, 0.0  ;;  %v589_v43 = vadd.f32 %v587_v1, %v582_v37  ;;  %v647_v60 = vstv %s1510_s26  ;;  %v654_v6 = vstv %s1520_s27 }
  0x93   :  { %505 = vst [vmem:[#allocation13 + $0x8] sm:$0xff] %v503_v53  ;;  %v630_v52 = vadd.f32 %v628_v51, %v623_v57  ;;  %v648_v18 = vmul.f32 %v647_v60, %v1254_v12  ;;  %v655_v33 = vmul.f32 %v654_v6, %v1317_v61  ;;  %v661_v59 = vstv %s1531_s28 }
  0x94   :  { %574 = vst [vmem:[#allocation13 + $0x18] sm:$0xff] %v571_v31  ;;  %v596_v14 = vadd.f32 %v594_v63, %v589_v43  ;;  %v668_v44 = vstv %s1536_s29  ;;  %v608_v8 = vmul.f32 %v606_v55, %v1413_v4  ;;  %v662_v40 = vmul.f32 %v661_v59, %v1319_v24 }
  0x95   :  { %v637_v36 = vadd.f32 %v635_v28, %v630_v52  ;;  %v650_v47 = vadd.f32 %v648_v18, %v644_v20  ;;  %v615_v12 = vmul.f32 %v613_v26, %v1415_v21  ;;  %v675_v17 = vstv %s1547_s30 }
  0x96   :  { %v603_v23 = vadd.f32 %v601_v16, %v596_v14  ;;  %v622_v48 = vmul.f32 %v620_v2, %v1491_v27  ;;  %v669_v3 = vmul.f32 %v668_v44, %v1340_v35  ;;  %v649_v55 = vmul.f32 %v647_v60, %v1336_v41 }
  0x97   :  { %v639_v42 = vmax.f32 %v637_v36, 0.0  ;;  %v657_v25 = vadd.f32 %v655_v33, %v650_v47  ;;  %v676_v10 = vmul.f32 %v675_v17, %v1392_v30  ;;  %v682_v26 = vstv %s1562_s6 }
  0x98   :  { %v610_v61 = vadd.f32 %v608_v8, %v603_v23  ;;  %v689_v49 = vstv %s1564_s7  ;;  %v651_v32 = vadd.f32 %v649_v55, %v644_v20  ;;  %v656_v0 = vmul.f32 %v654_v6, %v1352_v5 }
  0x99   :  { %642 = vst [vmem:[#allocation13 + $0x20] sm:$0xff] %v639_v42  ;;  %v664_v13 = vadd.f32 %v662_v40, %v657_v25  ;;  %v629_v2 = vmul.f32 %v627_v56, %v1493_v39  ;;  %v683_v9 = vmul.f32 %v682_v26, %v1394_v15  ;;  %v696_v38 = vstv %s1571_s0 }
  0x9a   :  { %v617_v24 = vadd.f32 %v615_v12, %v610_v61  ;;  %v658_v50 = vadd.f32 %v656_v0, %v651_v32  ;;  %v663_v41 = vmul.f32 %v661_v59, %v1366_v54  ;;  %v670_v62 = vmul.f32 %v668_v44, %v1396_v46 }
  0x9b   :  { %v671_v35 = vadd.f32 %v669_v3, %v664_v13  ;;  %v636_v34 = vmul.f32 %v634_v29, %v1512_v45  ;;  %v690_v5 = vmul.f32 %v689_v49, %v1423_v58  ;;  %v697_v56 = vmul.f32 %v696_v38, %v1473_v11 }
  0x9c   :  { %v624_v22 = vadd.f32 %v622_v48, %v617_v24  ;;  %v665_v7 = vadd.f32 %v663_v41, %v658_v50  ;;  %v703_v53 = vstv %s1587_s1  ;;  %v677_v15 = vmul.f32 %v675_v17, %v1413_v4 }
  0x9d   :  { %v678_v51 = vadd.f32 %v676_v10, %v671_v35  ;;  %v704_v54 = vmul.f32 %v703_v53, %v1475_v19  ;;  %v684_v43 = vmul.f32 %v682_v26, %v1415_v21  ;;  %v691_v29 = vmul.f32 %v689_v49, %v1491_v27 }
  0x9e   :  { %v631_v30 = vadd.f32 %v629_v2, %v624_v22  ;;  %v672_v57 = vadd.f32 %v670_v62, %v665_v7  ;;  %v698_v11 = vmul.f32 %v696_v38, %v1493_v39  ;;  %v705_v4 = vmul.f32 %v703_v53, %v1512_v45 }
  0x9f   :  { %v685_v1 = vadd.f32 %v683_v9, %v678_v51 }
  0xa0   :  { %v638_v37 = vadd.f32 %v636_v34, %v631_v30  ;;  %v679_v46 = vadd.f32 %v677_v15, %v672_v57 }
  0xa1   :  { %v692_v31 = vadd.f32 %v690_v5, %v685_v1 }
  0xa2   :  { %v640_v28 = vmax.f32 %v638_v37, 0.0  ;;  %v686_v63 = vadd.f32 %v684_v43, %v679_v46 }
  0xa3   :  { %v699_v58 = vadd.f32 %v697_v56, %v692_v31 }
  0xa4   :  { %643 = vst [vmem:[#allocation13 + $0x28] sm:$0xff] %v640_v28  ;;  %v693_v52 = vadd.f32 %v691_v29, %v686_v63 }
  0xa5   :  { %v706_v16 = vadd.f32 %v704_v54, %v699_v58 }
  0xa6   :  { %v700_v60 = vadd.f32 %v698_v11, %v693_v52 }
  0xa7   :  { %v708_v20 = vmax.f32 %v706_v16, 0.0 }
  0xa8   :  { %v707_v19 = vadd.f32 %v705_v4, %v700_v60 }
  0xa9   :  { %711 = vst [vmem:[#allocation13 + $0x30] sm:$0xff] %v708_v20 }
  0xaa   :  { %v709_v6 = vmax.f32 %v707_v19, 0.0 }
  0xac   :  { %712 = vst [vmem:[#allocation13 + $0x38] sm:$0xff] %v709_v6 }
  0xad   :  { %892 = shalt.err (!%p889_p10)
}
  0xae   :  { %724 = dma.vmem_to_hbm [thread:$0]  %s719_s8, 1024, %s1622_s5, [#allocation5], %s916_s10, %s916_s10, %s917_s11  }
  0xaf   :  { %909 = dma.done.wait [#allocation5], 1024  }
  0xb0   :  { %910 = vsyncadd [#allocation5], 4294966272 }
  0xb1   :  { %728 = vsyncpa [#allocation4], 1 }
  0xb2   :  { %729 = vsyncpa [#allocation5], 1 }
  0xb3   :  { %730 = vsyncpa [#allocation6], 1 }
  0xb4   :  { %731 = vsyncpa [#allocation7], 1 }
  0xb5   :  { %732 = vsyncpa [#allocation10], 1 }

</bundles_post_ra>
